<compile_context>
chip_gen: v7x
topology: tpu7x:2x2x1
jax: 0.10.0
libtpu: 0.0.40
codegen_flags: <defaults>
</compile_context>

<pallas_src>
import functools

import jax
import jax.numpy as jnp
from jax.experimental import pallas as pl
from jax.experimental.pallas import tpu as pltpu

CP = 128  # lane-padded channel width for every internal activation / weight


def _pick_batch_tile(n, max_bt=8):
    """Largest divisor of n that is <= max_bt (keeps the grid exact)."""
    for bt in range(min(n, max_bt), 0, -1):
        if n % bt == 0:
            return bt
    return 1


# ----------------------------------------------------------------------------
# Fused Pallas kernel: stem matmul + (dw3x3 s1, pw1x1) + (dw3x3 s2, pw1x1)
# ----------------------------------------------------------------------------
def _mobilenet_fused_kernel(patches_ref, wstem_ref, bstem_ref,
                            wdw1_ref, bdw1_ref, wpw1_ref, bpw1_ref,
                            wdw2_ref, bdw2_ref, wpw2_ref, bpw2_ref,
                            o_ref, act1_ref, act2_ref,
                            *, bt, ho1, wo1, ho2, wo2):
    f32 = jnp.float32
    bf16 = jnp.bfloat16

    def zero_border(ref):
        # Only the 1-wide pad border needs zeroing; the interior is fully
        # overwritten below.  Correct on every core under "parallel" semantics.
        ref[:, 0:1, :, :] = jnp.zeros((bt, 1, wo1 + 2, CP), f32)
        ref[:, ho1 + 1:ho1 + 2, :, :] = jnp.zeros((bt, 1, wo1 + 2, CP), f32)
        ref[:, :, 0:1, :] = jnp.zeros((bt, ho1 + 2, 1, CP), f32)
        ref[:, :, wo1 + 1:wo1 + 2, :] = jnp.zeros((bt, ho1 + 2, 1, CP), f32)

    # --- stem: 3x3 s2 conv as one im2col matmul (bf16 operands, BN pre-folded)
    p = patches_ref[...].reshape(bt * ho1 * wo1, -1)             # bf16, K padded
    y = jnp.dot(p, wstem_ref[...], preferred_element_type=f32)
    y = jnp.maximum(y + bstem_ref[...], 0.0)                     # (bt*ho1*wo1, CP)

    # --- block 1: depthwise 3x3 stride 1 + ReLU (f32 VPU) ---------------------
    zero_border(act1_ref)
    act1_ref[:, 1:1 + ho1, 1:1 + wo1, :] = y.reshape(bt, ho1, wo1, CP)
    wdw1 = wdw1_ref[...]                                         # (9, CP) hoisted
    acc = act1_ref[:, 0:ho1, 0:wo1, :] * wdw1[0]                 # tap (0,0) seeds acc
    for kh in range(3):
        for kw in range(3):
            if kh == 0 and kw == 0:
                continue
            acc = acc + act1_ref[:, kh:kh + ho1, kw:kw + wo1, :] * wdw1[3 * kh + kw]
    y = jnp.maximum(acc + bdw1_ref[...], 0.0)                    # (bt, ho1, wo1, CP)

    # --- block 1: pointwise 1x1 + ReLU (bf16 MXU, f32 accumulate) -------------
    y = jnp.dot(y.reshape(bt * ho1 * wo1, CP).astype(bf16), wpw1_ref[...],
                preferred_element_type=f32)
    y = jnp.maximum(y + bpw1_ref[...], 0.0)

    # --- block 2: depthwise 3x3 stride 2 + ReLU (pl.ds strided taps) ----------
    zero_border(act2_ref)
    act2_ref[:, 1:1 + ho1, 1:1 + wo1, :] = y.reshape(bt, ho1, wo1, CP)
    wdw2 = wdw2_ref[...]                                         # (9, CP) hoisted
    acc = (act2_ref[:, pl.ds(0, ho2, stride=2), pl.ds(0, wo2, stride=2), :]
           * wdw2[0])
    for kh in range(3):
        for kw in range(3):
            if kh == 0 and kw == 0:
                continue
            patch = act2_ref[:, pl.ds(kh, ho2, stride=2),
                             pl.ds(kw, wo2, stride=2), :]
            acc = acc + patch * wdw2[3 * kh + kw]
    y = jnp.maximum(acc + bdw2_ref[...], 0.0)                    # (bt, ho2, wo2, CP)

    # --- block 2: pointwise 1x1 + ReLU -----------------------------------------
    y = jnp.dot(y.reshape(bt * ho2 * wo2, CP).astype(bf16), wpw2_ref[...],
                preferred_element_type=f32)
    y = jnp.maximum(y + bpw2_ref[...], 0.0)                      # (bt*ho2*wo2, CP)
    o_ref[...] = y.reshape(bt, ho2 * wo2, CP)                    # lane-dense store


# ----------------------------------------------------------------------------
# Wrapper: NCHW in / NCHW out, one pallas_call over a batch-tiled grid
# ----------------------------------------------------------------------------
def _im2col_3x3_s2(x_nhwc, kpad):
    """Stem-only im2col (stride 2, pad 1), K padded + bf16 cast done host-side."""
    n, h, w, c = x_nhwc.shape
    xp = jnp.pad(x_nhwc, ((0, 0), (1, 1), (1, 1), (0, 0)))
    ho, wo = h // 2, w // 2
    cols = []
    for kh in range(3):
        for kw in range(3):
            cols.append(xp[:, kh:kh + 2 * ho:2, kw:kw + 2 * wo:2, :])
    patches = jnp.stack(cols, axis=3).reshape(n, ho * wo, 9 * c)
    patches = jnp.pad(patches, ((0, 0), (0, 0), (0, kpad - 9 * c)))
    return patches.astype(jnp.bfloat16)


def mobilenet_forward(pp, x_nchw, max_batch_tile=8):
    n, _, h, w = x_nchw.shape
    ho1, wo1 = h // 2, w // 2
    ho2, wo2 = ho1 // 2, wo1 // 2
    bt = _pick_batch_tile(n, max_batch_tile)
    kpad = pp["kpad"]

    x = jnp.transpose(x_nchw, (0, 2, 3, 1)).astype(jnp.float32)     # NHWC
    patches = _im2col_3x3_s2(x, kpad)                               # (n, ho1*wo1, kpad) bf16

    kernel = functools.partial(_mobilenet_fused_kernel,
                               bt=bt, ho1=ho1, wo1=wo1, ho2=ho2, wo2=wo2)

    def _full(a):
        # whole (small) parameter array resident in VMEM across the grid
        return pl.BlockSpec(a.shape, lambda nb: (0,) * a.ndim)

    weights = (pp["stem_w"], pp["stem_b"], pp["dw1_w"], pp["dw1_b"],
               pp["pw1_w"], pp["pw1_b"], pp["dw2_w"], pp["dw2_b"],
               pp["pw2_w"], pp["pw2_b"])

    out = pl.pallas_call(
        kernel,
        out_shape=jax.ShapeDtypeStruct((n, ho2 * wo2, CP), jnp.float32),
        grid=(n // bt,),
        in_specs=[pl.BlockSpec((bt, ho1 * wo1, kpad), lambda nb: (nb, 0, 0))]
                 + [_full(a) for a in weights],
        out_specs=pl.BlockSpec((bt, ho2 * wo2, CP), lambda nb: (nb, 0, 0)),
        scratch_shapes=[
            pltpu.VMEM((bt, ho1 + 2, wo1 + 2, CP), jnp.float32),   # padded act (dw1)
            pltpu.VMEM((bt, ho1 + 2, wo1 + 2, CP), jnp.float32),   # padded act (dw2)
        ],
        compiler_params=pltpu.CompilerParams(
            dimension_semantics=("parallel",),   # shard batch tiles across TCs
        ),
    )(patches, *weights)

    out = out.reshape(n, ho2, wo2, CP)[..., :pp["c3"]]   # drop lane padding
    return jnp.transpose(out, (0, 3, 1, 2))              # NCHW, like PyTorch


# ----------------------------------------------------------------------------
# Parameters: torch-like init, BN folding, Pallas layout prep (fold + pad + bf16)
# ----------------------------------------------------------------------------
def fold_bn(gamma, beta, mean, var, eps=1e-5):
    scale = gamma / jnp.sqrt(var + eps)
    return scale, beta - mean * scale


def _bn_params(key, c):
    k1, k2, k3 = jax.random.split(key, 3)
    gamma = 1.0 + 0.1 * jax.random.normal(k1, (c,), jnp.float32)
    beta = 0.1 * jax.random.normal(k2, (c,), jnp.float32)
    mean = 0.1 * jax.random.normal(k3, (c,), jnp.float32)
    var = jnp.ones((c,), jnp.float32)
    return fold_bn(gamma, beta, mean, var)


def init_params(key, cin=3, c1=16, c2=32, c3=64):
    ks = jax.random.split(key, 10)
    p = {}
    p["stem_w"] = 0.1 * jax.random.normal(ks[0], (3, 3, cin, c1), jnp.float32)
    p["stem_bn"] = _bn_params(ks[1], c1)
    p["dw1_w"] = 0.1 * jax.random.normal(ks[2], (3, 3, c1), jnp.float32)
    p["dw1_bn"] = _bn_params(ks[3], c1)
    p["pw1_w"] = 0.1 * jax.random.normal(ks[4], (c1, c2), jnp.float32)
    p["pw1_bn"] = _bn_params(ks[5], c2)
    p["dw2_w"] = 0.1 * jax.random.normal(ks[6], (3, 3, c2), jnp.float32)
    p["dw2_bn"] = _bn_params(ks[7], c2)
    p["pw2_w"] = 0.1 * jax.random.normal(ks[8], (c2, c3), jnp.float32)
    p["pw2_bn"] = _bn_params(ks[9], c3)
    return p


def prep_pallas_params(p):
    """Fold BN scale into weights, pad channels to 128 lanes, bf16 MXU weights."""
    def pad_to(a, shape):
        return jnp.pad(a, [(0, s - d) for d, s in zip(a.shape, shape)])

    _, _, cin, c1 = p["stem_w"].shape
    c2 = p["pw1_w"].shape[1]
    c3 = p["pw2_w"].shape[1]
    kpad = ((9 * cin + 31) // 32) * 32     # 27 -> 32: aligned bf16 stem A-operand

    s0, b0 = p["stem_bn"]
    s1, b1 = p["dw1_bn"]
    s2, b2 = p["pw1_bn"]
    s3, b3 = p["dw2_bn"]
    s4, b4 = p["pw2_bn"]

    stem_w = (p["stem_w"] * s0).reshape(9 * cin, c1)      # (tap*cin, c1)
    return {
        "c3": c3,
        "kpad": kpad,
        "stem_w": pad_to(stem_w, (kpad, CP)).astype(jnp.bfloat16),
        "stem_b": pad_to(b0.reshape(1, c1), (1, CP)).astype(jnp.float32),
        "dw1_w": pad_to((p["dw1_w"] * s1).reshape(9, c1), (9, CP)).astype(jnp.float32),
        "dw1_b": pad_to(b1.reshape(1, c1), (1, CP)).astype(jnp.float32),
        "pw1_w": pad_to(p["pw1_w"] * s2, (CP, CP)).astype(jnp.bfloat16),
        "pw1_b": pad_to(b2.reshape(1, c2), (1, CP)).astype(jnp.float32),
        "dw2_w": pad_to((p["dw2_w"] * s3).reshape(9, c2), (9, CP)).astype(jnp.float32),
        "dw2_b": pad_to(b3.reshape(1, c2), (1, CP)).astype(jnp.float32),
        "pw2_w": pad_to(p["pw2_w"] * s4, (CP, CP)).astype(jnp.bfloat16),
        "pw2_b": pad_to(b4.reshape(1, c3), (1, CP)).astype(jnp.float32),
    }


# ----------------------------------------------------------------------------
# Pure-JAX reference (f32, lax convs) for a correctness check
# ----------------------------------------------------------------------------
def mobilenet_reference(params, x_nchw):
    dn = ("NHWC", "HWIO", "NHWC")
    x = jnp.transpose(x_nchw, (0, 2, 3, 1)).astype(jnp.float32)

    s, b = params["stem_bn"]
    y = jax.lax.conv_general_dilated(x, params["stem_w"], (2, 2),
                                     ((1, 1), (1, 1)), dimension_numbers=dn)
    y = jnp.maximum(y * s + b, 0.0)

    s, b = params["dw1_bn"]
    c1 = y.shape[-1]
    y = jax.lax.conv_general_dilated(y, params["dw1_w"].reshape(3, 3, 1, c1),
                                     (1, 1), ((1, 1), (1, 1)),
                                     dimension_numbers=dn, feature_group_count=c1)
    y = jnp.maximum(y * s + b, 0.0)
    s, b = params["pw1_bn"]
    y = jnp.maximum(jnp.einsum("nhwc,cd->nhwd", y, params["pw1_w"]) * s + b, 0.0)

    s, b = params["dw2_bn"]
    c2 = y.shape[-1]
    y = jax.lax.conv_general_dilated(y, params["dw2_w"].reshape(3, 3, 1, c2),
                                     (2, 2), ((1, 1), (1, 1)),
                                     dimension_numbers=dn, feature_group_count=c2)
    y = jnp.maximum(y * s + b, 0.0)
    s, b = params["pw2_bn"]
    y = jnp.maximum(jnp.einsum("nhwc,cd->nhwd", y, params["pw2_w"]) * s + b, 0.0)
    return jnp.transpose(y, (0, 3, 1, 2))


if __name__ == "__main__":
    key = jax.random.PRNGKey(0)
    k_param, k_x = jax.random.split(key)
    params = init_params(k_param)
    x = jax.random.normal(k_x, (2, 3, 16, 16), jnp.float32)   # NCHW, like PyTorch

    pp = prep_pallas_params(params)
    fwd = jax.jit(lambda xx: mobilenet_forward(pp, xx))
    out = jax.block_until_ready(fwd(x))

    assert out.shape == (2, 64, 4, 4), out.shape
    assert bool(jnp.all(jnp.isfinite(out)))

    ref = mobilenet_reference(params, x)
    assert bool(jnp.allclose(out, ref, rtol=5e-2, atol=5e-2)), \
        float(jnp.max(jnp.abs(out - ref)))
    print("KERNEL_OK")
</pallas_src>

<mosaic_0001>
module attributes {stable_mosaic.version = 11 : i64} {
  func.func @_mobilenet_fused_kernel(%arg0: i32, %arg1: memref<2x64x32xbf16, #tpu.memory_space<vmem>>, %arg2: memref<32x128xbf16, #tpu.memory_space<vmem>>, %arg3: memref<1x128xf32, #tpu.memory_space<vmem>>, %arg4: memref<9x128xf32, #tpu.memory_space<vmem>>, %arg5: memref<1x128xf32, #tpu.memory_space<vmem>>, %arg6: memref<128x128xbf16, #tpu.memory_space<vmem>>, %arg7: memref<1x128xf32, #tpu.memory_space<vmem>>, %arg8: memref<9x128xf32, #tpu.memory_space<vmem>>, %arg9: memref<1x128xf32, #tpu.memory_space<vmem>>, %arg10: memref<128x128xbf16, #tpu.memory_space<vmem>>, %arg11: memref<1x128xf32, #tpu.memory_space<vmem>>, %arg12: memref<2x16x128xf32, #tpu.memory_space<vmem>>, %arg13: memref<2x10x10x128xf32, #tpu.memory_space<vmem>>, %arg14: memref<2x10x10x128xf32, #tpu.memory_space<vmem>>) attributes {dimension_semantics = [#tpu.dimension_semantics<parallel>], iteration_bounds = array<i64: 1>, scalar_prefetch = 0 : i64, scratch_operands = 2 : i64, tpu.core_type = #tpu.core_type<tc>, window_params = [{transform_indices = @transform_0, window_bounds = array<i64: 2, 64, 32>}, {pipeline_mode = #tpu.pipeline_mode<synchronous>, transform_indices = @transform_1, window_bounds = array<i64: 32, 128>}, {pipeline_mode = #tpu.pipeline_mode<synchronous>, transform_indices = @transform_2, window_bounds = array<i64: 1, 128>}, {pipeline_mode = #tpu.pipeline_mode<synchronous>, transform_indices = @transform_3, window_bounds = array<i64: 9, 128>}, {pipeline_mode = #tpu.pipeline_mode<synchronous>, transform_indices = @transform_4, window_bounds = array<i64: 1, 128>}, {pipeline_mode = #tpu.pipeline_mode<synchronous>, transform_indices = @transform_5, window_bounds = array<i64: 128, 128>}, {pipeline_mode = #tpu.pipeline_mode<synchronous>, transform_indices = @transform_6, window_bounds = array<i64: 1, 128>}, {pipeline_mode = #tpu.pipeline_mode<synchronous>, transform_indices = @transform_7, window_bounds = array<i64: 9, 128>}, {pipeline_mode = #tpu.pipeline_mode<synchronous>, transform_indices = @transform_8, window_bounds = array<i64: 1, 128>}, {pipeline_mode = #tpu.pipeline_mode<synchronous>, transform_indices = @transform_9, window_bounds = array<i64: 128, 128>}, {pipeline_mode = #tpu.pipeline_mode<synchronous>, transform_indices = @transform_10, window_bounds = array<i64: 1, 128>}, {transform_indices = @transform_11, window_bounds = array<i64: 2, 16, 128>}]} {
    %c0 = arith.constant 0 : index
    %c0_0 = arith.constant 0 : index
    %c0_1 = arith.constant 0 : index
    %0 = vector.load %arg1[%c0, %c0_0, %c0_1] : memref<2x64x32xbf16, #tpu.memory_space<vmem>>, vector<2x64x32xbf16>
    %1 = vector.shape_cast %0 : vector<2x64x32xbf16> to vector<128x32xbf16>
    %c0_2 = arith.constant 0 : index
    %c0_3 = arith.constant 0 : index
    %2 = vector.load %arg2[%c0_2, %c0_3] : memref<32x128xbf16, #tpu.memory_space<vmem>>, vector<32x128xbf16>
    %cst = arith.constant dense<0.000000e+00> : vector<128x128xf32>
    %3 = tpu.matmul %1, %2, %cst {dimension_numbers = #tpu.dot_dimension_numbers<[1], [0], [0], [1], [0, 0, 1, 1], [], []>} : vector<128x32xbf16>, vector<32x128xbf16>, vector<128x128xf32> -> vector<128x128xf32>
    %c0_4 = arith.constant 0 : index
    %c0_5 = arith.constant 0 : index
    %4 = vector.load %arg3[%c0_4, %c0_5] : memref<1x128xf32, #tpu.memory_space<vmem>>, vector<1x128xf32>
    %5 = vector.broadcast %4 : vector<1x128xf32> to vector<128x128xf32>
    %6 = arith.addf %3, %5 : vector<128x128xf32>
    %cst_6 = arith.constant 0.000000e+00 : f32
    %7 = vector.broadcast %cst_6 : f32 to vector<128x128xf32>
    %8 = arith.maximumf %6, %7 : vector<128x128xf32>
    %cst_7 = arith.constant 0.000000e+00 : f32
    %9 = vector.broadcast %cst_7 : f32 to vector<2x1x10x128xf32>
    %c0_8 = arith.constant 0 : index
    %c0_9 = arith.constant 0 : index
    %c0_10 = arith.constant 0 : index
    %c0_11 = arith.constant 0 : index
    %10 = vector.load %arg13[%c0_8, %c0_9, %c0_10, %c0_11] : memref<2x10x10x128xf32, #tpu.memory_space<vmem>>, vector<2x1x10x128xf32>
    tpu.vector_store %arg13[%c0_8, %c0_9, %c0_10, %c0_11], %9 {strides = array<i32>} : memref<2x10x10x128xf32, #tpu.memory_space<vmem>>, vector<2x1x10x128xf32>,
    %cst_12 = arith.constant 0.000000e+00 : f32
    %11 = vector.broadcast %cst_12 : f32 to vector<2x1x10x128xf32>
    %c0_13 = arith.constant 0 : index
    %c9 = arith.constant 9 : index
    %c0_14 = arith.constant 0 : index
    %c0_15 = arith.constant 0 : index
    %12 = vector.load %arg13[%c0_13, %c9, %c0_14, %c0_15] : memref<2x10x10x128xf32, #tpu.memory_space<vmem>>, vector<2x1x10x128xf32>
    tpu.vector_store %arg13[%c0_13, %c9, %c0_14, %c0_15], %11 {strides = array<i32>} : memref<2x10x10x128xf32, #tpu.memory_space<vmem>>, vector<2x1x10x128xf32>,
    %cst_16 = arith.constant 0.000000e+00 : f32
    %13 = vector.broadcast %cst_16 : f32 to vector<2x10x1x128xf32>
    %c0_17 = arith.constant 0 : index
    %c0_18 = arith.constant 0 : index
    %c0_19 = arith.constant 0 : index
    %c0_20 = arith.constant 0 : index
    %14 = vector.load %arg13[%c0_17, %c0_18, %c0_19, %c0_20] : memref<2x10x10x128xf32, #tpu.memory_space<vmem>>, vector<2x10x1x128xf32>
    tpu.vector_store %arg13[%c0_17, %c0_18, %c0_19, %c0_20], %13 {strides = array<i32>} : memref<2x10x10x128xf32, #tpu.memory_space<vmem>>, vector<2x10x1x128xf32>,
    %cst_21 = arith.constant 0.000000e+00 : f32
    %15 = vector.broadcast %cst_21 : f32 to vector<2x10x1x128xf32>
    %c0_22 = arith.constant 0 : index
    %c0_23 = arith.constant 0 : index
    %c9_24 = arith.constant 9 : index
    %c0_25 = arith.constant 0 : index
    %16 = vector.load %arg13[%c0_22, %c0_23, %c9_24, %c0_25] : memref<2x10x10x128xf32, #tpu.memory_space<vmem>>, vector<2x10x1x128xf32>
    tpu.vector_store %arg13[%c0_22, %c0_23, %c9_24, %c0_25], %15 {strides = array<i32>} : memref<2x10x10x128xf32, #tpu.memory_space<vmem>>, vector<2x10x1x128xf32>,
    %17 = vector.shape_cast %8 : vector<128x128xf32> to vector<2x8x8x128xf32>
    %c0_26 = arith.constant 0 : index
    %c1 = arith.constant 1 : index
    %c1_27 = arith.constant 1 : index
    %c0_28 = arith.constant 0 : index
    %18 = vector.load %arg13[%c0_26, %c1, %c1_27, %c0_28] : memref<2x10x10x128xf32, #tpu.memory_space<vmem>>, vector<2x8x8x128xf32>
    tpu.vector_store %arg13[%c0_26, %c1, %c1_27, %c0_28], %17 {strides = array<i32>} : memref<2x10x10x128xf32, #tpu.memory_space<vmem>>, vector<2x8x8x128xf32>,
    %c0_29 = arith.constant 0 : index
    %c0_30 = arith.constant 0 : index
    %19 = vector.load %arg4[%c0_29, %c0_30] : memref<9x128xf32, #tpu.memory_space<vmem>>, vector<9x128xf32>
    %c0_31 = arith.constant 0 : index
    %c0_32 = arith.constant 0 : index
    %c0_33 = arith.constant 0 : index
    %c0_34 = arith.constant 0 : index
    %20 = vector.load %arg13[%c0_31, %c0_32, %c0_33, %c0_34] : memref<2x10x10x128xf32, #tpu.memory_space<vmem>>, vector<2x8x8x128xf32>
    %21 = vector.extract_strided_slice %19 {offsets = [0, 0], sizes = [1, 128], strides = [1, 1]} : vector<9x128xf32> to vector<1x128xf32>
    %22 = vector.shape_cast %21 : vector<1x128xf32> to vector<128xf32>
    %23 = vector.shape_cast %22 : vector<128xf32> to vector<1x1x1x128xf32>
    %24 = vector.broadcast %23 : vector<1x1x1x128xf32> to vector<2x8x8x128xf32>
    %25 = arith.mulf %20, %24 : vector<2x8x8x128xf32>
    %c0_35 = arith.constant 0 : index
    %c0_36 = arith.constant 0 : index
    %c1_37 = arith.constant 1 : index
    %c0_38 = arith.constant 0 : index
    %26 = vector.load %arg13[%c0_35, %c0_36, %c1_37, %c0_38] : memref<2x10x10x128xf32, #tpu.memory_space<vmem>>, vector<2x8x8x128xf32>
    %27 = vector.extract_strided_slice %19 {offsets = [1, 0], sizes = [1, 128], strides = [1, 1]} : vector<9x128xf32> to vector<1x128xf32>
    %28 = vector.shape_cast %27 : vector<1x128xf32> to vector<128xf32>
    %29 = vector.shape_cast %28 : vector<128xf32> to vector<1x1x1x128xf32>
    %30 = vector.broadcast %29 : vector<1x1x1x128xf32> to vector<2x8x8x128xf32>
    %31 = arith.mulf %26, %30 : vector<2x8x8x128xf32>
    %32 = arith.addf %25, %31 : vector<2x8x8x128xf32>
    %c0_39 = arith.constant 0 : index
    %c0_40 = arith.constant 0 : index
    %c2 = arith.constant 2 : index
    %c0_41 = arith.constant 0 : index
    %33 = vector.load %arg13[%c0_39, %c0_40, %c2, %c0_41] : memref<2x10x10x128xf32, #tpu.memory_space<vmem>>, vector<2x8x8x128xf32>
    %34 = vector.extract_strided_slice %19 {offsets = [2, 0], sizes = [1, 128], strides = [1, 1]} : vector<9x128xf32> to vector<1x128xf32>
    %35 = vector.shape_cast %34 : vector<1x128xf32> to vector<128xf32>
    %36 = vector.shape_cast %35 : vector<128xf32> to vector<1x1x1x128xf32>
    %37 = vector.broadcast %36 : vector<1x1x1x128xf32> to vector<2x8x8x128xf32>
    %38 = arith.mulf %33, %37 : vector<2x8x8x128xf32>
    %39 = arith.addf %32, %38 : vector<2x8x8x128xf32>
    %c0_42 = arith.constant 0 : index
    %c1_43 = arith.constant 1 : index
    %c0_44 = arith.constant 0 : index
    %c0_45 = arith.constant 0 : index
    %40 = vector.load %arg13[%c0_42, %c1_43, %c0_44, %c0_45] : memref<2x10x10x128xf32, #tpu.memory_space<vmem>>, vector<2x8x8x128xf32>
    %41 = vector.extract_strided_slice %19 {offsets = [3, 0], sizes = [1, 128], strides = [1, 1]} : vector<9x128xf32> to vector<1x128xf32>
    %42 = vector.shape_cast %41 : vector<1x128xf32> to vector<128xf32>
    %43 = vector.shape_cast %42 : vector<128xf32> to vector<1x1x1x128xf32>
    %44 = vector.broadcast %43 : vector<1x1x1x128xf32> to vector<2x8x8x128xf32>
    %45 = arith.mulf %40, %44 : vector<2x8x8x128xf32>
    %46 = arith.addf %39, %45 : vector<2x8x8x128xf32>
    %c0_46 = arith.constant 0 : index
    %c1_47 = arith.constant 1 : index
    %c1_48 = arith.constant 1 : index
    %c0_49 = arith.constant 0 : index
    %47 = vector.load %arg13[%c0_46, %c1_47, %c1_48, %c0_49] : memref<2x10x10x128xf32, #tpu.memory_space<vmem>>, vector<2x8x8x128xf32>
    %48 = vector.extract_strided_slice %19 {offsets = [4, 0], sizes = [1, 128], strides = [1, 1]} : vector<9x128xf32> to vector<1x128xf32>
    %49 = vector.shape_cast %48 : vector<1x128xf32> to vector<128xf32>
    %50 = vector.shape_cast %49 : vector<128xf32> to vector<1x1x1x128xf32>
    %51 = vector.broadcast %50 : vector<1x1x1x128xf32> to vector<2x8x8x128xf32>
    %52 = arith.mulf %47, %51 : vector<2x8x8x128xf32>
    %53 = arith.addf %46, %52 : vector<2x8x8x128xf32>
    %c0_50 = arith.constant 0 : index
    %c1_51 = arith.constant 1 : index
    %c2_52 = arith.constant 2 : index
    %c0_53 = arith.constant 0 : index
    %54 = vector.load %arg13[%c0_50, %c1_51, %c2_52, %c0_53] : memref<2x10x10x128xf32, #tpu.memory_space<vmem>>, vector<2x8x8x128xf32>
    %55 = vector.extract_strided_slice %19 {offsets = [5, 0], sizes = [1, 128], strides = [1, 1]} : vector<9x128xf32> to vector<1x128xf32>
    %56 = vector.shape_cast %55 : vector<1x128xf32> to vector<128xf32>
    %57 = vector.shape_cast %56 : vector<128xf32> to vector<1x1x1x128xf32>
    %58 = vector.broadcast %57 : vector<1x1x1x128xf32> to vector<2x8x8x128xf32>
    %59 = arith.mulf %54, %58 : vector<2x8x8x128xf32>
    %60 = arith.addf %53, %59 : vector<2x8x8x128xf32>
    %c0_54 = arith.constant 0 : index
    %c2_55 = arith.constant 2 : index
    %c0_56 = arith.constant 0 : index
    %c0_57 = arith.constant 0 : index
    %61 = vector.load %arg13[%c0_54, %c2_55, %c0_56, %c0_57] : memref<2x10x10x128xf32, #tpu.memory_space<vmem>>, vector<2x8x8x128xf32>
    %62 = vector.extract_strided_slice %19 {offsets = [6, 0], sizes = [1, 128], strides = [1, 1]} : vector<9x128xf32> to vector<1x128xf32>
    %63 = vector.shape_cast %62 : vector<1x128xf32> to vector<128xf32>
    %64 = vector.shape_cast %63 : vector<128xf32> to vector<1x1x1x128xf32>
    %65 = vector.broadcast %64 : vector<1x1x1x128xf32> to vector<2x8x8x128xf32>
    %66 = arith.mulf %61, %65 : vector<2x8x8x128xf32>
    %67 = arith.addf %60, %66 : vector<2x8x8x128xf32>
    %c0_58 = arith.constant 0 : index
    %c2_59 = arith.constant 2 : index
    %c1_60 = arith.constant 1 : index
    %c0_61 = arith.constant 0 : index
    %68 = vector.load %arg13[%c0_58, %c2_59, %c1_60, %c0_61] : memref<2x10x10x128xf32, #tpu.memory_space<vmem>>, vector<2x8x8x128xf32>
    %69 = vector.extract_strided_slice %19 {offsets = [7, 0], sizes = [1, 128], strides = [1, 1]} : vector<9x128xf32> to vector<1x128xf32>
    %70 = vector.shape_cast %69 : vector<1x128xf32> to vector<128xf32>
    %71 = vector.shape_cast %70 : vector<128xf32> to vector<1x1x1x128xf32>
    %72 = vector.broadcast %71 : vector<1x1x1x128xf32> to vector<2x8x8x128xf32>
    %73 = arith.mulf %68, %72 : vector<2x8x8x128xf32>
    %74 = arith.addf %67, %73 : vector<2x8x8x128xf32>
    %c0_62 = arith.constant 0 : index
    %c2_63 = arith.constant 2 : index
    %c2_64 = arith.constant 2 : index
    %c0_65 = arith.constant 0 : index
    %75 = vector.load %arg13[%c0_62, %c2_63, %c2_64, %c0_65] : memref<2x10x10x128xf32, #tpu.memory_space<vmem>>, vector<2x8x8x128xf32>
    %76 = vector.extract_strided_slice %19 {offsets = [8, 0], sizes = [1, 128], strides = [1, 1]} : vector<9x128xf32> to vector<1x128xf32>
    %77 = vector.shape_cast %76 : vector<1x128xf32> to vector<128xf32>
    %78 = vector.shape_cast %77 : vector<128xf32> to vector<1x1x1x128xf32>
    %79 = vector.broadcast %78 : vector<1x1x1x128xf32> to vector<2x8x8x128xf32>
    %80 = arith.mulf %75, %79 : vector<2x8x8x128xf32>
    %81 = arith.addf %74, %80 : vector<2x8x8x128xf32>
    %c0_66 = arith.constant 0 : index
    %c0_67 = arith.constant 0 : index
    %82 = vector.load %arg5[%c0_66, %c0_67] : memref<1x128xf32, #tpu.memory_space<vmem>>, vector<1x128xf32>
    %83 = vector.shape_cast %82 : vector<1x128xf32> to vector<1x1x1x128xf32>
    %84 = vector.broadcast %83 : vector<1x1x1x128xf32> to vector<2x8x8x128xf32>
    %85 = arith.addf %81, %84 : vector<2x8x8x128xf32>
    %cst_68 = arith.constant 0.000000e+00 : f32
    %86 = vector.broadcast %cst_68 : f32 to vector<2x8x8x128xf32>
    %87 = arith.maximumf %85, %86 : vector<2x8x8x128xf32>
    %88 = vector.shape_cast %87 : vector<2x8x8x128xf32> to vector<128x128xf32>
    %89 = arith.truncf %88 : vector<128x128xf32> to vector<128x128xbf16>
    %c0_69 = arith.constant 0 : index
    %c0_70 = arith.constant 0 : index
    %90 = vector.load %arg6[%c0_69, %c0_70] : memref<128x128xbf16, #tpu.memory_space<vmem>>, vector<128x128xbf16>
    %cst_71 = arith.constant dense<0.000000e+00> : vector<128x128xf32>
    %91 = tpu.matmul %89, %90, %cst_71 {dimension_numbers = #tpu.dot_dimension_numbers<[1], [0], [0], [1], [0, 0, 1, 1], [], []>} : vector<128x128xbf16>, vector<128x128xbf16>, vector<128x128xf32> -> vector<128x128xf32>
    %c0_72 = arith.constant 0 : index
    %c0_73 = arith.constant 0 : index
    %92 = vector.load %arg7[%c0_72, %c0_73] : memref<1x128xf32, #tpu.memory_space<vmem>>, vector<1x128xf32>
    %93 = vector.broadcast %92 : vector<1x128xf32> to vector<128x128xf32>
    %94 = arith.addf %91, %93 : vector<128x128xf32>
    %cst_74 = arith.constant 0.000000e+00 : f32
    %95 = vector.broadcast %cst_74 : f32 to vector<128x128xf32>
    %96 = arith.maximumf %94, %95 : vector<128x128xf32>
    %cst_75 = arith.constant 0.000000e+00 : f32
    %97 = vector.broadcast %cst_75 : f32 to vector<2x1x10x128xf32>
    %c0_76 = arith.constant 0 : index
    %c0_77 = arith.constant 0 : index
    %c0_78 = arith.constant 0 : index
    %c0_79 = arith.constant 0 : index
    %98 = vector.load %arg14[%c0_76, %c0_77, %c0_78, %c0_79] : memref<2x10x10x128xf32, #tpu.memory_space<vmem>>, vector<2x1x10x128xf32>
    tpu.vector_store %arg14[%c0_76, %c0_77, %c0_78, %c0_79], %97 {strides = array<i32>} : memref<2x10x10x128xf32, #tpu.memory_space<vmem>>, vector<2x1x10x128xf32>,
    %cst_80 = arith.constant 0.000000e+00 : f32
    %99 = vector.broadcast %cst_80 : f32 to vector<2x1x10x128xf32>
    %c0_81 = arith.constant 0 : index
    %c9_82 = arith.constant 9 : index
    %c0_83 = arith.constant 0 : index
    %c0_84 = arith.constant 0 : index
    %100 = vector.load %arg14[%c0_81, %c9_82, %c0_83, %c0_84] : memref<2x10x10x128xf32, #tpu.memory_space<vmem>>, vector<2x1x10x128xf32>
    tpu.vector_store %arg14[%c0_81, %c9_82, %c0_83, %c0_84], %99 {strides = array<i32>} : memref<2x10x10x128xf32, #tpu.memory_space<vmem>>, vector<2x1x10x128xf32>,
    %cst_85 = arith.constant 0.000000e+00 : f32
    %101 = vector.broadcast %cst_85 : f32 to vector<2x10x1x128xf32>
    %c0_86 = arith.constant 0 : index
    %c0_87 = arith.constant 0 : index
    %c0_88 = arith.constant 0 : index
    %c0_89 = arith.constant 0 : index
    %102 = vector.load %arg14[%c0_86, %c0_87, %c0_88, %c0_89] : memref<2x10x10x128xf32, #tpu.memory_space<vmem>>, vector<2x10x1x128xf32>
    tpu.vector_store %arg14[%c0_86, %c0_87, %c0_88, %c0_89], %101 {strides = array<i32>} : memref<2x10x10x128xf32, #tpu.memory_space<vmem>>, vector<2x10x1x128xf32>,
    %cst_90 = arith.constant 0.000000e+00 : f32
    %103 = vector.broadcast %cst_90 : f32 to vector<2x10x1x128xf32>
    %c0_91 = arith.constant 0 : index
    %c0_92 = arith.constant 0 : index
    %c9_93 = arith.constant 9 : index
    %c0_94 = arith.constant 0 : index
    %104 = vector.load %arg14[%c0_91, %c0_92, %c9_93, %c0_94] : memref<2x10x10x128xf32, #tpu.memory_space<vmem>>, vector<2x10x1x128xf32>
    tpu.vector_store %arg14[%c0_91, %c0_92, %c9_93, %c0_94], %103 {strides = array<i32>} : memref<2x10x10x128xf32, #tpu.memory_space<vmem>>, vector<2x10x1x128xf32>,
    %105 = vector.shape_cast %96 : vector<128x128xf32> to vector<2x8x8x128xf32>
    %c0_95 = arith.constant 0 : index
    %c1_96 = arith.constant 1 : index
    %c1_97 = arith.constant 1 : index
    %c0_98 = arith.constant 0 : index
    %106 = vector.load %arg14[%c0_95, %c1_96, %c1_97, %c0_98] : memref<2x10x10x128xf32, #tpu.memory_space<vmem>>, vector<2x8x8x128xf32>
    tpu.vector_store %arg14[%c0_95, %c1_96, %c1_97, %c0_98], %105 {strides = array<i32>} : memref<2x10x10x128xf32, #tpu.memory_space<vmem>>, vector<2x8x8x128xf32>,
    %c0_99 = arith.constant 0 : index
    %c0_100 = arith.constant 0 : index
    %107 = vector.load %arg8[%c0_99, %c0_100] : memref<9x128xf32, #tpu.memory_space<vmem>>, vector<9x128xf32>
    %c0_101 = arith.constant 0 : index
    %c0_102 = arith.constant 0 : index
    %c0_103 = arith.constant 0 : index
    %c0_104 = arith.constant 0 : index
    %108 = tpu.strided_load %arg14[%c0_101, %c0_102, %c0_103, %c0_104] {strides = array<i32: 1, 2, 2, 1>} : memref<2x10x10x128xf32, #tpu.memory_space<vmem>>, vector<2x4x4x128xf32>
    %109 = vector.extract_strided_slice %107 {offsets = [0, 0], sizes = [1, 128], strides = [1, 1]} : vector<9x128xf32> to vector<1x128xf32>
    %110 = vector.shape_cast %109 : vector<1x128xf32> to vector<128xf32>
    %111 = vector.shape_cast %110 : vector<128xf32> to vector<1x1x1x128xf32>
    %112 = vector.broadcast %111 : vector<1x1x1x128xf32> to vector<2x4x4x128xf32>
    %113 = arith.mulf %108, %112 : vector<2x4x4x128xf32>
    %c0_105 = arith.constant 0 : index
    %c0_106 = arith.constant 0 : index
    %c1_107 = arith.constant 1 : index
    %c0_108 = arith.constant 0 : index
    %114 = tpu.strided_load %arg14[%c0_105, %c0_106, %c1_107, %c0_108] {strides = array<i32: 1, 2, 2, 1>} : memref<2x10x10x128xf32, #tpu.memory_space<vmem>>, vector<2x4x4x128xf32>
    %115 = vector.extract_strided_slice %107 {offsets = [1, 0], sizes = [1, 128], strides = [1, 1]} : vector<9x128xf32> to vector<1x128xf32>
    %116 = vector.shape_cast %115 : vector<1x128xf32> to vector<128xf32>
    %117 = vector.shape_cast %116 : vector<128xf32> to vector<1x1x1x128xf32>
    %118 = vector.broadcast %117 : vector<1x1x1x128xf32> to vector<2x4x4x128xf32>
    %119 = arith.mulf %114, %118 : vector<2x4x4x128xf32>
    %120 = arith.addf %113, %119 : vector<2x4x4x128xf32>
    %c0_109 = arith.constant 0 : index
    %c0_110 = arith.constant 0 : index
    %c2_111 = arith.constant 2 : index
    %c0_112 = arith.constant 0 : index
    %121 = tpu.strided_load %arg14[%c0_109, %c0_110, %c2_111, %c0_112] {strides = array<i32: 1, 2, 2, 1>} : memref<2x10x10x128xf32, #tpu.memory_space<vmem>>, vector<2x4x4x128xf32>
    %122 = vector.extract_strided_slice %107 {offsets = [2, 0], sizes = [1, 128], strides = [1, 1]} : vector<9x128xf32> to vector<1x128xf32>
    %123 = vector.shape_cast %122 : vector<1x128xf32> to vector<128xf32>
    %124 = vector.shape_cast %123 : vector<128xf32> to vector<1x1x1x128xf32>
    %125 = vector.broadcast %124 : vector<1x1x1x128xf32> to vector<2x4x4x128xf32>
    %126 = arith.mulf %121, %125 : vector<2x4x4x128xf32>
    %127 = arith.addf %120, %126 : vector<2x4x4x128xf32>
    %c0_113 = arith.constant 0 : index
    %c1_114 = arith.constant 1 : index
    %c0_115 = arith.constant 0 : index
    %c0_116 = arith.constant 0 : index
    %128 = tpu.strided_load %arg14[%c0_113, %c1_114, %c0_115, %c0_116] {strides = array<i32: 1, 2, 2, 1>} : memref<2x10x10x128xf32, #tpu.memory_space<vmem>>, vector<2x4x4x128xf32>
    %129 = vector.extract_strided_slice %107 {offsets = [3, 0], sizes = [1, 128], strides = [1, 1]} : vector<9x128xf32> to vector<1x128xf32>
    %130 = vector.shape_cast %129 : vector<1x128xf32> to vector<128xf32>
    %131 = vector.shape_cast %130 : vector<128xf32> to vector<1x1x1x128xf32>
    %132 = vector.broadcast %131 : vector<1x1x1x128xf32> to vector<2x4x4x128xf32>
    %133 = arith.mulf %128, %132 : vector<2x4x4x128xf32>
    %134 = arith.addf %127, %133 : vector<2x4x4x128xf32>
    %c0_117 = arith.constant 0 : index
    %c1_118 = arith.constant 1 : index
    %c1_119 = arith.constant 1 : index
    %c0_120 = arith.constant 0 : index
    %135 = tpu.strided_load %arg14[%c0_117, %c1_118, %c1_119, %c0_120] {strides = array<i32: 1, 2, 2, 1>} : memref<2x10x10x128xf32, #tpu.memory_space<vmem>>, vector<2x4x4x128xf32>
    %136 = vector.extract_strided_slice %107 {offsets = [4, 0], sizes = [1, 128], strides = [1, 1]} : vector<9x128xf32> to vector<1x128xf32>
    %137 = vector.shape_cast %136 : vector<1x128xf32> to vector<128xf32>
    %138 = vector.shape_cast %137 : vector<128xf32> to vector<1x1x1x128xf32>
    %139 = vector.broadcast %138 : vector<1x1x1x128xf32> to vector<2x4x4x128xf32>
    %140 = arith.mulf %135, %139 : vector<2x4x4x128xf32>
    %141 = arith.addf %134, %140 : vector<2x4x4x128xf32>
    %c0_121 = arith.constant 0 : index
    %c1_122 = arith.constant 1 : index
    %c2_123 = arith.constant 2 : index
    %c0_124 = arith.constant 0 : index
    %142 = tpu.strided_load %arg14[%c0_121, %c1_122, %c2_123, %c0_124] {strides = array<i32: 1, 2, 2, 1>} : memref<2x10x10x128xf32, #tpu.memory_space<vmem>>, vector<2x4x4x128xf32>
    %143 = vector.extract_strided_slice %107 {offsets = [5, 0], sizes = [1, 128], strides = [1, 1]} : vector<9x128xf32> to vector<1x128xf32>
    %144 = vector.shape_cast %143 : vector<1x128xf32> to vector<128xf32>
    %145 = vector.shape_cast %144 : vector<128xf32> to vector<1x1x1x128xf32>
    %146 = vector.broadcast %145 : vector<1x1x1x128xf32> to vector<2x4x4x128xf32>
    %147 = arith.mulf %142, %146 : vector<2x4x4x128xf32>
    %148 = arith.addf %141, %147 : vector<2x4x4x128xf32>
    %c0_125 = arith.constant 0 : index
    %c2_126 = arith.constant 2 : index
    %c0_127 = arith.constant 0 : index
    %c0_128 = arith.constant 0 : index
    %149 = tpu.strided_load %arg14[%c0_125, %c2_126, %c0_127, %c0_128] {strides = array<i32: 1, 2, 2, 1>} : memref<2x10x10x128xf32, #tpu.memory_space<vmem>>, vector<2x4x4x128xf32>
    %150 = vector.extract_strided_slice %107 {offsets = [6, 0], sizes = [1, 128], strides = [1, 1]} : vector<9x128xf32> to vector<1x128xf32>
    %151 = vector.shape_cast %150 : vector<1x128xf32> to vector<128xf32>
    %152 = vector.shape_cast %151 : vector<128xf32> to vector<1x1x1x128xf32>
    %153 = vector.broadcast %152 : vector<1x1x1x128xf32> to vector<2x4x4x128xf32>
    %154 = arith.mulf %149, %153 : vector<2x4x4x128xf32>
    %155 = arith.addf %148, %154 : vector<2x4x4x128xf32>
    %c0_129 = arith.constant 0 : index
    %c2_130 = arith.constant 2 : index
    %c1_131 = arith.constant 1 : index
    %c0_132 = arith.constant 0 : index
    %156 = tpu.strided_load %arg14[%c0_129, %c2_130, %c1_131, %c0_132] {strides = array<i32: 1, 2, 2, 1>} : memref<2x10x10x128xf32, #tpu.memory_space<vmem>>, vector<2x4x4x128xf32>
    %157 = vector.extract_strided_slice %107 {offsets = [7, 0], sizes = [1, 128], strides = [1, 1]} : vector<9x128xf32> to vector<1x128xf32>
    %158 = vector.shape_cast %157 : vector<1x128xf32> to vector<128xf32>
    %159 = vector.shape_cast %158 : vector<128xf32> to vector<1x1x1x128xf32>
    %160 = vector.broadcast %159 : vector<1x1x1x128xf32> to vector<2x4x4x128xf32>
    %161 = arith.mulf %156, %160 : vector<2x4x4x128xf32>
    %162 = arith.addf %155, %161 : vector<2x4x4x128xf32>
    %c0_133 = arith.constant 0 : index
    %c2_134 = arith.constant 2 : index
    %c2_135 = arith.constant 2 : index
    %c0_136 = arith.constant 0 : index
    %163 = tpu.strided_load %arg14[%c0_133, %c2_134, %c2_135, %c0_136] {strides = array<i32: 1, 2, 2, 1>} : memref<2x10x10x128xf32, #tpu.memory_space<vmem>>, vector<2x4x4x128xf32>
    %164 = vector.extract_strided_slice %107 {offsets = [8, 0], sizes = [1, 128], strides = [1, 1]} : vector<9x128xf32> to vector<1x128xf32>
    %165 = vector.shape_cast %164 : vector<1x128xf32> to vector<128xf32>
    %166 = vector.shape_cast %165 : vector<128xf32> to vector<1x1x1x128xf32>
    %167 = vector.broadcast %166 : vector<1x1x1x128xf32> to vector<2x4x4x128xf32>
    %168 = arith.mulf %163, %167 : vector<2x4x4x128xf32>
    %169 = arith.addf %162, %168 : vector<2x4x4x128xf32>
    %c0_137 = arith.constant 0 : index
    %c0_138 = arith.constant 0 : index
    %170 = vector.load %arg9[%c0_137, %c0_138] : memref<1x128xf32, #tpu.memory_space<vmem>>, vector<1x128xf32>
    %171 = vector.shape_cast %170 : vector<1x128xf32> to vector<1x1x1x128xf32>
    %172 = vector.broadcast %171 : vector<1x1x1x128xf32> to vector<2x4x4x128xf32>
    %173 = arith.addf %169, %172 : vector<2x4x4x128xf32>
    %cst_139 = arith.constant 0.000000e+00 : f32
    %174 = vector.broadcast %cst_139 : f32 to vector<2x4x4x128xf32>
    %175 = arith.maximumf %173, %174 : vector<2x4x4x128xf32>
    %176 = vector.shape_cast %175 : vector<2x4x4x128xf32> to vector<32x128xf32>
    %177 = arith.truncf %176 : vector<32x128xf32> to vector<32x128xbf16>
    %c0_140 = arith.constant 0 : index
    %c0_141 = arith.constant 0 : index
    %178 = vector.load %arg10[%c0_140, %c0_141] : memref<128x128xbf16, #tpu.memory_space<vmem>>, vector<128x128xbf16>
    %cst_142 = arith.constant dense<0.000000e+00> : vector<32x128xf32>
    %179 = tpu.matmul %177, %178, %cst_142 {dimension_numbers = #tpu.dot_dimension_numbers<[1], [0], [0], [1], [0, 0, 1, 1], [], []>} : vector<32x128xbf16>, vector<128x128xbf16>, vector<32x128xf32> -> vector<32x128xf32>
    %c0_143 = arith.constant 0 : index
    %c0_144 = arith.constant 0 : index
    %180 = vector.load %arg11[%c0_143, %c0_144] : memref<1x128xf32, #tpu.memory_space<vmem>>, vector<1x128xf32>
    %181 = vector.broadcast %180 : vector<1x128xf32> to vector<32x128xf32>
    %182 = arith.addf %179, %181 : vector<32x128xf32>
    %cst_145 = arith.constant 0.000000e+00 : f32
    %183 = vector.broadcast %cst_145 : f32 to vector<32x128xf32>
    %184 = arith.maximumf %182, %183 : vector<32x128xf32>
    %185 = vector.shape_cast %184 : vector<32x128xf32> to vector<2x16x128xf32>
    %c0_146 = arith.constant 0 : index
    %c0_147 = arith.constant 0 : index
    %c0_148 = arith.constant 0 : index
    %186 = vector.load %arg12[%c0_146, %c0_147, %c0_148] : memref<2x16x128xf32, #tpu.memory_space<vmem>>, vector<2x16x128xf32>
    tpu.vector_store %arg12[%c0_146, %c0_147, %c0_148], %185 {strides = array<i32>} : memref<2x16x128xf32, #tpu.memory_space<vmem>>, vector<2x16x128xf32>,
    return
  }
  func.func @transform_0(%arg0: i32) -> (i32, i32, i32) {
    %c0_i32 = arith.constant 0 : i32
    %c0_i32_0 = arith.constant 0 : i32
    %c0_i32_1 = arith.constant 0 : i32
    return %arg0, %c0_i32, %c0_i32_0 : i32, i32, i32
  }
  func.func @transform_1(%arg0: i32) -> (i32, i32) {
    %c0_i32 = arith.constant 0 : i32
    %c0_i32_0 = arith.constant 0 : i32
    %c0_i32_1 = arith.constant 0 : i32
    return %c0_i32, %c0_i32_0 : i32, i32
  }
  func.func @transform_2(%arg0: i32) -> (i32, i32) {
    %c0_i32 = arith.constant 0 : i32
    %c0_i32_0 = arith.constant 0 : i32
    %c0_i32_1 = arith.constant 0 : i32
    return %c0_i32, %c0_i32_0 : i32, i32
  }
  func.func @transform_3(%arg0: i32) -> (i32, i32) {
    %c0_i32 = arith.constant 0 : i32
    %c0_i32_0 = arith.constant 0 : i32
    %c0_i32_1 = arith.constant 0 : i32
    return %c0_i32, %c0_i32_0 : i32, i32
  }
  func.func @transform_4(%arg0: i32) -> (i32, i32) {
    %c0_i32 = arith.constant 0 : i32
    %c0_i32_0 = arith.constant 0 : i32
    %c0_i32_1 = arith.constant 0 : i32
    return %c0_i32, %c0_i32_0 : i32, i32
  }
  func.func @transform_5(%arg0: i32) -> (i32, i32) {
    %c0_i32 = arith.constant 0 : i32
    %c0_i32_0 = arith.constant 0 : i32
    %c0_i32_1 = arith.constant 0 : i32
    return %c0_i32, %c0_i32_0 : i32, i32
  }
  func.func @transform_6(%arg0: i32) -> (i32, i32) {
    %c0_i32 = arith.constant 0 : i32
    %c0_i32_0 = arith.constant 0 : i32
    %c0_i32_1 = arith.constant 0 : i32
    return %c0_i32, %c0_i32_0 : i32, i32
  }
  func.func @transform_7(%arg0: i32) -> (i32, i32) {
    %c0_i32 = arith.constant 0 : i32
    %c0_i32_0 = arith.constant 0 : i32
    %c0_i32_1 = arith.constant 0 : i32
    return %c0_i32, %c0_i32_0 : i32, i32
  }
  func.func @transform_8(%arg0: i32) -> (i32, i32) {
    %c0_i32 = arith.constant 0 : i32
    %c0_i32_0 = arith.constant 0 : i32
    %c0_i32_1 = arith.constant 0 : i32
    return %c0_i32, %c0_i32_0 : i32, i32
  }
  func.func @transform_9(%arg0: i32) -> (i32, i32) {
    %c0_i32 = arith.constant 0 : i32
    %c0_i32_0 = arith.constant 0 : i32
    %c0_i32_1 = arith.constant 0 : i32
    return %c0_i32, %c0_i32_0 : i32, i32
  }
  func.func @transform_10(%arg0: i32) -> (i32, i32) {
    %c0_i32 = arith.constant 0 : i32
    %c0_i32_0 = arith.constant 0 : i32
    %c0_i32_1 = arith.constant 0 : i32
    return %c0_i32, %c0_i32_0 : i32, i32
  }
  func.func @transform_11(%arg0: i32) -> (i32, i32, i32) {
    %c0_i32 = arith.constant 0 : i32
    %c0_i32_0 = arith.constant 0 : i32
    %c0_i32_1 = arith.constant 0 : i32
    return %arg0, %c0_i32, %c0_i32_0 : i32, i32, i32
  }
}

</mosaic_0001>

<bundles_post_ra>
// kernel: _lambda_.1
= control target key start
LH: loop header
LB: loop body
LE: loop exit
PB: predicated region body
PF: predicated region fallthrough
CT: control target
= control target key end

     0   :  { %vm118_vm0 = vcmask 261120   ;;  %v1785_v10 = vmov 0.0   ;;  %v340_v19 = vlaneseq  ;;  %s2502_s1 = inlined_call_operand.vmem [shape: bf16[32,128], index: 1, kind: input, shape index: {}]   ;;  %s2503_s0 = inlined_call_operand.vmem [shape: bf16[2,64,32], index: 0, kind: input, shape index: {}]   ;;  %s2504_s5 = inlined_call_operand.vmem [shape: bf16[128,128], index: 5, kind: input, shape index: {}]   ;;  %s2505_s3 = inlined_call_operand.vmem [shape: f32[9,128], index: 3, kind: input, shape index: {}]   ;;  %s2506_s2 = inlined_call_operand.vmem [shape: f32[1,128], index: 2, kind: input, shape index: {}]   ;;  %s2507_s4 = inlined_call_operand.vmem [shape: f32[1,128], index: 4, kind: input, shape index: {}]   ;;  %s2508_s9 = inlined_call_operand.vmem [shape: bf16[128,128], index: 9, kind: input, shape index: {}]   ;;  %s2509_s6 = inlined_call_operand.vmem [shape: f32[1,128], index: 6, kind: input, shape index: {}]   ;;  %s2510_s7 = inlined_call_operand.vmem [shape: f32[9,128], index: 7, kind: input, shape index: {}]   ;;  %s2511_s8 = inlined_call_operand.vmem [shape: f32[1,128], index: 8, kind: input, shape index: {}]   ;;  %s2512_s10 = inlined_call_operand.vmem [shape: f32[1,128], index: 10, kind: input, shape index: {}]   ;;  %s2513_s11 = inlined_call_operand.vmem [shape: f32[2,16,128], index: 11, kind: output, shape index: {}]  }
   0x1   :  { %v1759_v0 = vld [vmem:[%s2502_s1] sm:$0xff]   ;;  %v1760_v1 = vld [vmem:[%s2502_s1 + $0x8] sm:$0xff]   ;;  %v1763_v4 = vld [vmem:[%s2503_s0 + $0x10] sm:$0xff]   ;;  %256 = vst [vmem:[#allocation2] sm:$0xff] %v1785_v10 }
   0x2   :  { %1686 = vmatprep.subr.bf16.mxu0 %v1759_v0  ;;  %v1761_v2 = vld [vmem:[%s2503_s0] sm:$0xff]   ;;  %v1762_v3 = vld [vmem:[%s2503_s0 + $0x8] sm:$0xff]   ;;  %v1764_v5 = vld [vmem:[%s2503_s0 + $0x18] sm:$0xff]   ;;  %257 = vst [vmem:[#allocation2 + $0x8] sm:$0x3] %v1785_v10  ;;  %v1978_v20 = vshrl.u32 %v340_v19, 7 }
   0x3   :  { %1687 = vmatpush3.bf16.msra.mxu0 %v1759_v0  ;;  %1690 = vmatprep.mubr.msk.bf16.mxu0 %vm118_vm0, %v1761_v2  ;;  %v1765_v6 = vld [vmem:[%s2503_s0 + $0x20] sm:$0xff]   ;;  %v1766_v7 = vld [vmem:[%s2503_s0 + $0x28] sm:$0xff]   ;;  %v1767_v8 = vld [vmem:[%s2503_s0 + $0x30] sm:$0xff]   ;;  %266 = vst [vmem:[#allocation2 + $0x10] sm:$0x1] %v1785_v10 }
   0x4   :  { %1688 = vmatprep.subr.bf16.mxu0 %v1760_v1  ;;  %v1768_v9 = vld [vmem:[%s2503_s0 + $0x38] sm:$0xff]   ;;  %267 = vst [vmem:[#allocation2 + $0x20] sm:$0x1] %v1785_v10  ;;  %268 = vst [vmem:[#allocation2 + $0x30] sm:$0x1] %v1785_v10  ;;  %v1769_v11 = vld [vmem:[%s2504_s5] sm:$0xff]  }
   0x5   :  { %286 = vst [vmem:[#allocation2 + $0x19] sm:$0x1] %v1785_v10  ;;  %287 = vst [vmem:[#allocation2 + $0x29] sm:$0x1] %v1785_v10  ;;  %1706 = vmatprep.subr.bf16.mxu1 %v1769_v11  ;;  %v1770_v12 = vld [vmem:[%s2504_s5 + $0x8] sm:$0xff]   ;;  %v1771_v13 = vld [vmem:[%s2504_s5 + $0x10] sm:$0xff]  }
   0x6   :  { %288 = vst [vmem:[#allocation2 + $0x39] sm:$0x1] %v1785_v10  ;;  %258 = vst [vmem:[#allocation2 + $0xa0] sm:$0xff] %v1785_v10  ;;  %1707 = vmatpush3.bf16.msra.mxu1 %v1769_v11  ;;  %v1772_v14 = vld [vmem:[%s2504_s5 + $0x18] sm:$0xff]   ;;  %v1773_v15 = vld [vmem:[%s2504_s5 + $0x20] sm:$0xff]   ;;  %v342_v21 = vsub.s32 0, %v1978_v20 }
   0x7   :  { %1689 = vmatpush3.bf16.msra.mxu0 %v1760_v1  ;;  %259 = vst [vmem:[#allocation2 + $0xa8] sm:$0x3] %v1785_v10  ;;  %261 = vst [vmem:[#allocation2 + $0x90] sm:$0xff] %v1785_v10  ;;  %1708 = vmatprep.subr.bf16.mxu1 %v1770_v12  ;;  %v1774_v16 = vld [vmem:[%s2504_s5 + $0x28] sm:$0xff]   ;;  %v1775_v17 = vld [vmem:[%s2504_s5 + $0x30] sm:$0xff]   ;;  %v378_v22 = vsub.s32 1, %v1978_v20 }
   0x8   :  { %262 = vst [vmem:[#allocation2 + $0x98] sm:$0x3] %v1785_v10  ;;  %263 = vst [vmem:[#allocation2 + $0x130] sm:$0xff] %v1785_v10  ;;  %v1776_v18 = vld [vmem:[%s2504_s5 + $0x38] sm:$0xff]   ;;  %v322_v23 = vld [vmem:[%s2505_s3] sm:$0xff]  ;;  %v430_v25 = vsub.s32 2, %v1978_v20 }
   0x9   :  { %264 = vst [vmem:[#allocation2 + $0x138] sm:$0x3] %v1785_v10  ;;  %269 = vst [vmem:[#allocation2 + $0x40] sm:$0x1] %v1785_v10  ;;  %v1987_v24 = vrot.slane %v322_v23, %v342_v21  ;;  %v360_v27 = vld [vmem:[#allocation2 + $0x1] sm:$0xff]  ;;  %v1992_v28 = vrot.slane %v322_v23, %v378_v22  ;;  %v2517_v41 = vsub.s32 4, %v1978_v20 }
   0xa   :  { %1691 = vmatmul.mubr.msk.bf16.vlgmr.msra.gmra.mrb[0].mxu0 %vm118_vm0, %v1762_v3  ;;  %270 = vst [vmem:[#allocation2 + $0x50] sm:$0x1] %v1785_v10  ;;  %271 = vst [vmem:[#allocation2 + $0x60] sm:$0x1] %v1785_v10  ;;  %1709 = vmatpush3.bf16.msra.mxu1 %v1770_v12  ;;  %v1997_v31 = vld [vmem:[%s2506_s2] ss:$0 sm:$0xff]  ;;  %v2003_v34 = vrot.slane %v322_v23, %v430_v25 }
   0xb   :  { %1694 = vmatprep.mubr.msk.bf16.mxu0 %vm118_vm0, %v1763_v4  ;;  %272 = vst [vmem:[#allocation2 + $0x70] sm:$0x1] %v1785_v10  ;;  %273 = vst [vmem:[#allocation2 + $0x80] sm:$0x1] %v1785_v10  ;;  %1710 = vmatprep.subr.bf16.mxu1 %v1771_v13  ;;  %v380_v33 = vmul.f32 %v1992_v28, %v360_v27  ;;  %v2514_v42 = vsub.s32 7, %v1978_v20  ;;  %v482_v46 = vsub.s32 3, %v1978_v20 }
   0xc   :  { %276 = vst [vmem:[#allocation2 + $0xb0] sm:$0x1] %v1785_v10  ;;  %277 = vst [vmem:[#allocation2 + $0xc0] sm:$0x1] %v1785_v10  ;;  %v2516_v47 = vsub.s32 5, %v1978_v20  ;;  %v2515_v48 = vsub.s32 6, %v1978_v20  ;;  %v2020_v59 = vrot.slane %v322_v23, %v2517_v41 }
   0xd   :  { %278 = vst [vmem:[#allocation2 + $0xd0] sm:$0x1] %v1785_v10  ;;  %279 = vst [vmem:[#allocation2 + $0xe0] sm:$0x1] %v1785_v10  ;;  %v2024_v60 = vrot.slane %v322_v23, %v2514_v42  ;;  %v2033_v2 = vld [vmem:[%s2505_s3 + $0x8] ss:$0 sm:$0xff]  ;;  %v2037_v4 = vrot.slane %v322_v23, %v482_v46 }
   0xe   :  { %280 = vst [vmem:[#allocation2 + $0xf0] sm:$0x1] %v1785_v10  ;;  %281 = vst [vmem:[#allocation2 + $0x100] sm:$0x1] %v1785_v10  ;;  %1711 = vmatpush3.bf16.msra.mxu1 %v1771_v13  ;;  %v368_v30 = vld [vmem:[#allocation2 + $0xa1] sm:$0xff]  ;;  %v2028_v1 = vrot.slane %v322_v23, %v2515_v48 }
   0xf   :  { %282 = vst [vmem:[#allocation2 + $0x110] sm:$0x1] %v1785_v10  ;;  %283 = vst [vmem:[#allocation2 + $0x120] sm:$0x1] %v1785_v10  ;;  %1712 = vmatprep.subr.bf16.mxu1 %v1772_v14  ;;  %v388_v38 = vmul.f32 %v1992_v28, %v368_v30  ;;  %v680_v62 = vld [vmem:[#allocation2 + $0x91] sm:$0xff] }
  0x10   :  { %289 = vst [vmem:[#allocation2 + $0x49] sm:$0x1] %v1785_v10  ;;  %290 = vst [vmem:[#allocation2 + $0x59] sm:$0x1] %v1785_v10 }
  0x11   :  { %291 = vst [vmem:[#allocation2 + $0x69] sm:$0x1] %v1785_v10  ;;  %292 = vst [vmem:[#allocation2 + $0x79] sm:$0x1] %v1785_v10 }
  0x12   :  { %1695 = vmatmul.mubr.msk.bf16.gmra.mrb[4].mxu0 %vm118_vm0, %v1764_v5  ;;  %293 = vst [vmem:[#allocation2 + $0x89] sm:$0x1] %v1785_v10  ;;  %296 = vst [vmem:[#allocation2 + $0xb9] sm:$0x1] %v1785_v10  ;;  %1713 = vmatpush3.bf16.msra.mxu1 %v1772_v14  ;;  %v2041_v5 = vrot.slane %v322_v23, %v2516_v47 }
  0x13   :  { %1698 = vmatprep.mubr.msk.bf16.mxu0 %vm118_vm0, %v1765_v6  ;;  %297 = vst [vmem:[#allocation2 + $0xc9] sm:$0x1] %v1785_v10  ;;  %298 = vst [vmem:[#allocation2 + $0xd9] sm:$0x1] %v1785_v10  ;;  %1714 = vmatprep.subr.bf16.mxu1 %v1773_v15 }
  0x14   :  { %299 = vst [vmem:[#allocation2 + $0xe9] sm:$0x1] %v1785_v10  ;;  %300 = vst [vmem:[#allocation2 + $0xf9] sm:$0x1] %v1785_v10 }
  0x15   :  { %301 = vst [vmem:[#allocation2 + $0x109] sm:$0x1] %v1785_v10  ;;  %302 = vst [vmem:[#allocation2 + $0x119] sm:$0x1] %v1785_v10 }
  0x16   :  { %303 = vst [vmem:[#allocation2 + $0x129] sm:$0x1] %v1785_v10  ;;  %1008 = vst [vmem:[#allocation3] sm:$0xff] %v1785_v10  ;;  %1715 = vmatpush3.bf16.msra.mxu1 %v1773_v15 }
  0x17   :  { %1009 = vst [vmem:[#allocation3 + $0x8] sm:$0x3] %v1785_v10  ;;  %1010 = vst [vmem:[#allocation3 + $0xa0] sm:$0xff] %v1785_v10  ;;  %1716 = vmatprep.subr.bf16.mxu1 %v1774_v16 }
  0x18   :  { %1011 = vst [vmem:[#allocation3 + $0xa8] sm:$0x3] %v1785_v10  ;;  %1018 = vst [vmem:[#allocation3 + $0x10] sm:$0x1] %v1785_v10 }
  0x19   :  { %1019 = vst [vmem:[#allocation3 + $0x20] sm:$0x1] %v1785_v10  ;;  %1020 = vst [vmem:[#allocation3 + $0x30] sm:$0x1] %v1785_v10 }
  0x1a   :  { %1699 = vmatmul.mubr.msk.bf16.gmra.mrb[8].mxu0 %vm118_vm0, %v1766_v7  ;;  %1021 = vst [vmem:[#allocation3 + $0x40] sm:$0x1] %v1785_v10  ;;  %1022 = vst [vmem:[#allocation3 + $0x50] sm:$0x1] %v1785_v10  ;;  %1717 = vmatpush3.bf16.msra.mxu1 %v1774_v16 }
  0x1b   :  { %1702 = vmatprep.mubr.msk.bf16.mxu0 %vm118_vm0, %v1767_v8  ;;  %1023 = vst [vmem:[#allocation3 + $0x60] sm:$0x1] %v1785_v10  ;;  %1024 = vst [vmem:[#allocation3 + $0x70] sm:$0x1] %v1785_v10  ;;  %1718 = vmatprep.subr.bf16.mxu1 %v1775_v17  ;;  %v2047_v8 = vmul.f32 %v2024_v60, %v680_v62 }
  0x1c   :  { %1025 = vst [vmem:[#allocation3 + $0x80] sm:$0x1] %v1785_v10  ;;  %1028 = vst [vmem:[#allocation3 + $0xb0] sm:$0x1] %v1785_v10 }
  0x1d   :  { %1029 = vst [vmem:[#allocation3 + $0xc0] sm:$0x1] %v1785_v10  ;;  %1030 = vst [vmem:[#allocation3 + $0xd0] sm:$0x1] %v1785_v10 }
  0x1e   :  { %1031 = vst [vmem:[#allocation3 + $0xe0] sm:$0x1] %v1785_v10  ;;  %1032 = vst [vmem:[#allocation3 + $0xf0] sm:$0x1] %v1785_v10  ;;  %1719 = vmatpush3.bf16.msra.mxu1 %v1775_v17 }
  0x1f   :  { %1033 = vst [vmem:[#allocation3 + $0x100] sm:$0x1] %v1785_v10  ;;  %1034 = vst [vmem:[#allocation3 + $0x110] sm:$0x1] %v1785_v10  ;;  %1720 = vmatprep.subr.bf16.mxu1 %v1776_v18 }
  0x20   :  { %1035 = vst [vmem:[#allocation3 + $0x120] sm:$0x1] %v1785_v10  ;;  %265 = vst [vmem:[#allocation2] sm:$0x1] %v1785_v10 }
  0x21   :  { %285 = vst [vmem:[#allocation2 + $0x9] sm:$0x1] %v1785_v10  ;;  %274 = vst [vmem:[#allocation2 + $0x90] sm:$0x1] %v1785_v10 }
  0x22   :  { %1703 = vmatmul.mubr.msk.bf16.gmra.mrb[12].mxu0 %vm118_vm0, %v1768_v9  ;;  %275 = vst [vmem:[#allocation2 + $0xa0] sm:$0x1] %v1785_v10  ;;  %284 = vst [vmem:[#allocation2 + $0x130] sm:$0x1] %v1785_v10  ;;  %1721 = vmatpush3.bf16.msra.mxu1 %v1776_v18 }
  0x23   :  { %294 = vst [vmem:[#allocation2 + $0x99] sm:$0x1] %v1785_v10  ;;  %295 = vst [vmem:[#allocation2 + $0xa9] sm:$0x1] %v1785_v10 }
  0x24   :  { %304 = vst [vmem:[#allocation2 + $0x139] sm:$0x1] %v1785_v10  ;;  %1017 = vst [vmem:[#allocation3] sm:$0x1] %v1785_v10 }
  0x25   :  { %1027 = vst [vmem:[#allocation3 + $0xa0] sm:$0x1] %v1785_v10 }
  0x27   :  { %v324_v26 = vld [vmem:[#allocation2] sm:$0xff] }
  0x28   :  { %v344_v32 = vmul.f32 %v1987_v24, %v324_v26  ;;  %v412_v36 = vld [vmem:[#allocation2 + $0x2] sm:$0xff]  ;;  %v628_v61 = vld [vmem:[#allocation2 + $0x90] sm:$0xff] }
  0x29   :  { %v332_v29 = vld [vmem:[#allocation2 + $0xa0] sm:$0xff]  ;;  %v432_v53 = vmul.f32 %v2003_v34, %v412_v36  ;;  %v2044_v7 = vmul.f32 %v2028_v1, %v628_v61 }
  0x2a   :  { %v352_v37 = vmul.f32 %v1987_v24, %v332_v29  ;;  %v420_v43 = vld [vmem:[#allocation2 + $0xa2] sm:$0xff]  ;;  %v396_v52 = vadd.f32 %v380_v33, %v344_v32  ;;  %v732_v63 = vld [vmem:[#allocation2 + $0x92] sm:$0xff] }
  0x2b   :  { %v440_v57 = vmul.f32 %v2003_v34, %v420_v43  ;;  %v2050_v9 = vmul.f32 %v2033_v2, %v732_v63 }
  0x2c   :  { %v404_v56 = vadd.f32 %v388_v38, %v352_v37  ;;  %v448_v3 = vadd.f32 %v432_v53, %v396_v52 }
  0x2e   :  { %v2052_v10 = vadd.f32 %v440_v57, %v404_v56 }
  0xdd   :  { %v1692_v35 = vpop.f32.mrb[0].mxu0 }
  0xde   :  { %v186_v39 = vadd.f32 %v1692_v35, %v1997_v31  ;;  %v177_v40 = vpop.f32.mrb[1].mxu0 }
  0xdf   :  { %v178_v44 = vadd.f32 %v1997_v31, %v177_v40  ;;  %v1693_v45 = vpop.f32.mrb[2].mxu0 }
  0xe0   :  { %v242_v49 = vmax.f32 %v186_v39, 0.0  ;;  %v189_v50 = vadd.f32 %v1693_v45, %v1997_v31  ;;  %v180_v51 = vpop.f32.mrb[3].mxu0 }
  0xe1   :  { %v240_v54 = vmax.f32 %v178_v44, 0.0  ;;  %v181_v55 = vadd.f32 %v1997_v31, %v180_v51 }
  0xe2   :  { %308 = vst [vmem:[#allocation2 + $0x31] sm:$0xff] %v242_v49  ;;  %v243_v58 = vmax.f32 %v189_v50, 0.0  ;;  %v2056_v13 = vmul.f32 %v2024_v60, %v242_v49  ;;  %v383_v14 = vmul.f32 %v1992_v28, %v242_v49  ;;  %v2060_v15 = vmul.f32 %v2020_v59, %v242_v49 }
  0xe3   :  { %306 = vst [vmem:[#allocation2 + $0x11] sm:$0xff] %v240_v54  ;;  %v241_v0 = vmax.f32 %v181_v55, 0.0  ;;  %v381_v18 = vmul.f32 %v1992_v28, %v240_v54  ;;  %v536_v19 = vmul.f32 %v2020_v59, %v240_v54 }
  0xe4   :  { %309 = vst [vmem:[#allocation2 + $0x41] sm:$0xff] %v243_v58  ;;  %v2066_v23 = vmul.f32 %v2020_v59, %v243_v58  ;;  %v2072_v30 = vmul.f32 %v2024_v60, %v243_v58  ;;  %v2075_v32 = vmul.f32 %v1992_v28, %v243_v58 }
  0xe5   :  { %307 = vst [vmem:[#allocation2 + $0x21] sm:$0xff] %v241_v0  ;;  %v1696_v6 = vpop.f32.mrb[4].mxu0  ;;  %v537_v36 = vmul.f32 %v2020_v59, %v241_v0  ;;  %v2082_v38 = vmul.f32 %v2024_v60, %v241_v0  ;;  %v382_v50 = vmul.f32 %v1992_v28, %v241_v0 }
  0xe6   :  { %v202_v11 = vadd.f32 %v1696_v6, %v1997_v31  ;;  %v193_v12 = vpop.f32.mrb[5].mxu0 }
  0xe7   :  { %v194_v16 = vadd.f32 %v1997_v31, %v193_v12  ;;  %v1697_v17 = vpop.f32.mrb[6].mxu0 }
  0xe8   :  { %v2068_v26 = vmax.f32 %v202_v11, 0.0  ;;  %v205_v27 = vadd.f32 %v1697_v17, %v1997_v31  ;;  %v196_v29 = vpop.f32.mrb[7].mxu0 }
  0xe9   :  { %v2077_v33 = vmax.f32 %v194_v16, 0.0  ;;  %v197_v35 = vadd.f32 %v1997_v31, %v196_v29  ;;  %v622_v37 = vld [vmem:[#allocation2 + $0x30] sm:$0xff] }
  0xea   :  { %v726_v39 = vld [vmem:[#allocation2 + $0x32] sm:$0xff]  ;;  %312 = vst [vmem:[#allocation2 + $0x71] sm:$0xff] %v2068_v26  ;;  %v2085_v40 = vmax.f32 %v205_v27, 0.0  ;;  %v2088_v45 = vmul.f32 %v2028_v1, %v622_v37  ;;  %v347_v49 = vmul.f32 %v622_v37, %v1987_v24  ;;  %v486_v12 = vmul.f32 %v622_v37, %v2037_v4 }
  0xeb   :  { %v325_v43 = vld [vmem:[#allocation2 + $0x10] sm:$0xff]  ;;  %310 = vst [vmem:[#allocation2 + $0x51] sm:$0xff] %v2077_v33  ;;  %v2093_v51 = vmax.f32 %v197_v35, 0.0  ;;  %v2098_v54 = vmul.f32 %v2033_v2, %v726_v39  ;;  %v435_v62 = vmul.f32 %v726_v39, %v2003_v34 }
  0xec   :  { %v413_v44 = vld [vmem:[#allocation2 + $0x12] sm:$0xff]  ;;  %v345_v52 = vmul.f32 %v1987_v24, %v325_v43  ;;  %v484_v53 = vmul.f32 %v2037_v4, %v325_v43  ;;  %313 = vst [vmem:[#allocation2 + $0x81] sm:$0xff] %v2085_v40  ;;  %v465_v56 = vld [vmem:[#allocation2 + $0x20] sm:$0xff]  ;;  %v399_v61 = vadd.f32 %v383_v14, %v347_v49 }
  0xed   :  { %v433_v55 = vmul.f32 %v2003_v34, %v413_v44  ;;  %v569_v57 = vld [vmem:[#allocation2 + $0x22] sm:$0xff]  ;;  %v588_v58 = vmul.f32 %v2041_v5, %v413_v44  ;;  %311 = vst [vmem:[#allocation2 + $0x61] sm:$0xff] %v2093_v51  ;;  %v1700_v63 = vpop.f32.mrb[8].mxu0  ;;  %v485_v6 = vmul.f32 %v2037_v4, %v465_v56  ;;  %v641_v29 = vmul.f32 %v2028_v1, %v465_v56 }
  0xee   :  { %v397_v0 = vadd.f32 %v381_v18, %v345_v52  ;;  %v500_v11 = vadd.f32 %v484_v53, %v448_v3  ;;  %v218_v16 = vadd.f32 %v1700_v63, %v1997_v31  ;;  %v209_v17 = vpop.f32.mrb[9].mxu0  ;;  %v589_v27 = vmul.f32 %v2041_v5, %v569_v57  ;;  %v467_v52 = vld [vmem:[#allocation2 + $0x40] sm:$0xff] }
  0xef   :  { %v346_v14 = vmul.f32 %v465_v56, %v1987_v24  ;;  %v210_v35 = vadd.f32 %v1997_v31, %v209_v17  ;;  %v1701_v43 = vpop.f32.mrb[10].mxu0  ;;  %v434_v18 = vmul.f32 %v569_v57, %v2003_v34  ;;  %v451_v42 = vadd.f32 %v435_v62, %v399_v61  ;;  %v571_v17 = vld [vmem:[#allocation2 + $0x42] sm:$0xff] }
  0xf0   :  { %v449_v44 = vadd.f32 %v433_v55, %v397_v0  ;;  %v552_v49 = vadd.f32 %v536_v19, %v500_v11  ;;  %v2113_v3 = vmax.f32 %v218_v16, 0.0  ;;  %v221_v37 = vadd.f32 %v1701_v43, %v1997_v31  ;;  %v212_v53 = vpop.f32.mrb[11].mxu0 }
  0xf1   :  { %v398_v63 = vadd.f32 %v382_v50, %v346_v14  ;;  %v2116_v48 = vmax.f32 %v210_v35, 0.0  ;;  %v213_v47 = vadd.f32 %v1997_v31, %v212_v53  ;;  %v745_v55 = vmul.f32 %v2033_v2, %v569_v57 }
  0xf2   :  { %v501_v56 = vadd.f32 %v485_v6, %v449_v44  ;;  %v604_v41 = vadd.f32 %v588_v58, %v552_v49  ;;  %316 = vst [vmem:[#allocation2 + $0xd1] sm:$0xff] %v2113_v3  ;;  %v2120_v19 = vmax.f32 %v221_v37, 0.0  ;;  %v487_v11 = vmul.f32 %v2037_v4, %v467_v52  ;;  %v624_v16 = vld [vmem:[#allocation2 + $0x50] sm:$0xff] }
  0xf3   :  { %v450_v0 = vadd.f32 %v434_v18, %v398_v63  ;;  %314 = vst [vmem:[#allocation2 + $0xb1] sm:$0xff] %v2116_v48  ;;  %v2125_v50 = vmax.f32 %v213_v47, 0.0  ;;  %v590_v6 = vmul.f32 %v726_v39, %v2041_v5  ;;  %v591_v35 = vmul.f32 %v2041_v5, %v571_v17 }
  0xf4   :  { %v553_v61 = vadd.f32 %v537_v36, %v501_v56  ;;  %v657_v62 = vadd.f32 %v641_v29, %v604_v41  ;;  %317 = vst [vmem:[#allocation2 + $0xe1] sm:$0xff] %v2120_v19  ;;  %v503_v14 = vadd.f32 %v487_v11, %v451_v42  ;;  %v643_v57 = vmul.f32 %v2028_v1, %v467_v52  ;;  %v2140_v42 = vld [vmem:[%s2507_s4] ss:$0 sm:$0xff] }
  0xf5   :  { %v502_v58 = vadd.f32 %v486_v12, %v450_v0  ;;  %315 = vst [vmem:[#allocation2 + $0xc1] sm:$0xff] %v2125_v50  ;;  %v1704_v43 = vpop.f32.mrb[12].mxu0  ;;  %v644_v47 = vmul.f32 %v2028_v1, %v624_v16  ;;  %v696_v41 = vmul.f32 %v2024_v60, %v2077_v33  ;;  %v348_v63 = vmul.f32 %v467_v52, %v1987_v24 }
  0xf6   :  { %v605_v44 = vadd.f32 %v589_v27, %v553_v61  ;;  %v709_v49 = vadd.f32 %v2082_v38, %v657_v62  ;;  %v234_v36 = vadd.f32 %v1704_v43, %v1997_v31  ;;  %v225_v39 = vpop.f32.mrb[13].mxu0  ;;  %v555_v29 = vadd.f32 %v2066_v23, %v503_v14  ;;  %v728_v43 = vld [vmem:[#allocation2 + $0x52] sm:$0xff] }
  0xf7   :  { %v554_v12 = vadd.f32 %v2060_v15, %v502_v58  ;;  %v747_v27 = vmul.f32 %v2033_v2, %v571_v17  ;;  %v226_v38 = vadd.f32 %v1997_v31, %v225_v39  ;;  %v1705_v18 = vpop.f32.mrb[14].mxu0  ;;  %v469_v39 = vld [vmem:[#allocation2 + $0x60] sm:$0xff] }
  0xf8   :  { %v658_v37 = vadd.f32 %v2088_v45, %v605_v44  ;;  %v761_v53 = vadd.f32 %v745_v55, %v709_v49  ;;  %v254_v56 = vmax.f32 %v234_v36, 0.0  ;;  %v237_v0 = vadd.f32 %v1705_v18, %v1997_v31  ;;  %v228_v11 = vpop.f32.mrb[15].mxu0 }
  0xf9   :  { %v606_v61 = vadd.f32 %v590_v6, %v554_v12  ;;  %v607_v62 = vadd.f32 %v591_v35, %v555_v29  ;;  %v2149_v15 = vmax.f32 %v226_v38, 0.0  ;;  %v2152_v23 = vadd.f32 %v1997_v31, %v228_v11 }
  0xfa   :  { %v710_v58 = vadd.f32 %v2056_v13, %v658_v37  ;;  %v784_v14 = vadd.f32 %v2140_v42, %v761_v53  ;;  %320 = vst [vmem:[#allocation2 + $0x111] sm:$0xff] %v254_v56  ;;  %v255_v45 = vmax.f32 %v237_v0, 0.0  ;;  %v349_v44 = vmul.f32 %v624_v16, %v1987_v24 }
  0xfb   :  { %v659_v55 = vadd.f32 %v643_v57, %v606_v61  ;;  %v660_v52 = vadd.f32 %v644_v47, %v607_v62  ;;  %318 = vst [vmem:[#allocation2 + $0xf1] sm:$0xff] %v2149_v15  ;;  %v253_v6 = vmax.f32 %v2152_v23, 0.0  ;;  %v748_v49 = vmul.f32 %v2033_v2, %v728_v43  ;;  %v626_v62 = vld [vmem:[#allocation2 + $0x70] sm:$0xff] }
  0xfc   :  { %v762_v35 = vadd.f32 %v2098_v54, %v710_v58  ;;  %v385_v31 = vmul.f32 %v1992_v28, %v2077_v33  ;;  %321 = vst [vmem:[#allocation2 + $0x121] sm:$0xff] %v255_v45  ;;  %v400_v57 = vadd.f32 %v2075_v32, %v348_v63  ;;  %v436_v47 = vmul.f32 %v571_v17, %v2003_v34 }
  0xfd   :  { %v711_v13 = vadd.f32 %v2072_v30, %v659_v55  ;;  %v712_v36 = vadd.f32 %v696_v41, %v660_v52  ;;  %319 = vst [vmem:[#allocation2 + $0x101] sm:$0xff] %v253_v6  ;;  %v437_v29 = vmul.f32 %v728_v43, %v2003_v34  ;;  %v488_v38 = vmul.f32 %v624_v16, %v2037_v4  ;;  %v573_v41 = vld [vmem:[#allocation2 + $0x62] sm:$0xff] }
  0xfe   :  { %v785_v12 = vadd.f32 %v2140_v42, %v762_v35  ;;  %v401_v54 = vadd.f32 %v385_v31, %v349_v44  ;;  %v800_v18 = vmax.f32 %v784_v14, 0.0  ;;  %v452_v30 = vadd.f32 %v436_v47, %v400_v57 }
  0xff   :  { %v763_v37 = vadd.f32 %v747_v27, %v711_v13  ;;  %v764_v53 = vadd.f32 %v748_v49, %v712_v36  ;;  %v489_v17 = vmul.f32 %v2037_v4, %v469_v39  ;;  %v540_v63 = vmul.f32 %v2020_v59, %v2077_v33  ;;  %v730_v36 = vld [vmem:[#allocation2 + $0x72] sm:$0xff] }
 0x100   :  { %v801_v56 = vmax.f32 %v785_v12, 0.0  ;;  %v453_v32 = vadd.f32 %v437_v29, %v401_v54  ;;  %v504_v61 = vadd.f32 %v488_v38, %v452_v30  ;;  %v541_v16 = vmul.f32 %v2020_v59, %v2093_v51 }
 0x101   :  { %v786_v0 = vadd.f32 %v2140_v42, %v763_v37  ;;  %v787_v11 = vadd.f32 %v2140_v42, %v764_v53  ;;  %v592_v14 = vmul.f32 %v728_v43, %v2041_v5  ;;  %v593_v45 = vmul.f32 %v2041_v5, %v573_v41  ;;  %v471_v37 = vld [vmem:[#allocation2 + $0x80] sm:$0xff] }
 0x102   :  { %v816_v27 = vpack.c.bf16 %v801_v56, %v800_v18  ;;  %v505_v58 = vadd.f32 %v489_v17, %v453_v32  ;;  %v556_v44 = vadd.f32 %v540_v63, %v504_v61  ;;  %v645_v33 = vmul.f32 %v2028_v1, %v469_v39 }
 0x103   :  { %v802_v55 = vmax.f32 %v786_v0, 0.0  ;;  %v803_v52 = vmax.f32 %v787_v11, 0.0  ;;  %v646_v49 = vmul.f32 %v2028_v1, %v626_v62  ;;  %v697_v31 = vmul.f32 %v2024_v60, %v2093_v51  ;;  %v575_v11 = vld [vmem:[#allocation2 + $0x82] sm:$0xff] }
 0x104   :  { %1722 = vmatprep.mubr.bf16.mxu1 %v816_v27  ;;  %v557_v35 = vadd.f32 %v541_v16, %v505_v58  ;;  %v698_v13 = vmul.f32 %v2024_v60, %v2068_v26  ;;  %v608_v43 = vadd.f32 %v592_v14, %v556_v44  ;;  %v749_v47 = vmul.f32 %v2033_v2, %v573_v41  ;;  %v333_v58 = vld [vmem:[#allocation2 + $0xb0] sm:$0xff] }
 0x105   :  { %v817_v57 = vpack.c.bf16 %v803_v52, %v802_v55  ;;  %v350_v12 = vmul.f32 %v469_v39, %v1987_v24  ;;  %v351_v29 = vmul.f32 %v626_v62, %v1987_v24  ;;  %v386_v38 = vmul.f32 %v1992_v28, %v2093_v51 }
 0x106   :  { %v609_v54 = vadd.f32 %v593_v45, %v557_v35  ;;  %v387_v18 = vmul.f32 %v1992_v28, %v2068_v26  ;;  %v661_v53 = vadd.f32 %v645_v33, %v608_v43  ;;  %v750_v30 = vmul.f32 %v2033_v2, %v730_v36  ;;  %v421_v35 = vld [vmem:[#allocation2 + $0xb2] sm:$0xff]  ;;  %v473_v43 = vld [vmem:[#allocation2 + $0xc0] sm:$0xff] }
 0x107   :  { %1723 = vmatmul.mubr.bf16.vlgmr.msra.gmra.mrb[0].mxu1 %v817_v57  ;;  %v438_v56 = vmul.f32 %v573_v41, %v2003_v34  ;;  %v439_v32 = vmul.f32 %v730_v36, %v2003_v34  ;;  %v402_v39 = vadd.f32 %v386_v38, %v350_v12  ;;  %v490_v0 = vmul.f32 %v626_v62, %v2037_v4 }
 0x108   :  { %v662_v17 = vadd.f32 %v646_v49, %v609_v54  ;;  %v403_v63 = vadd.f32 %v387_v18, %v351_v29  ;;  %v713_v61 = vadd.f32 %v697_v31, %v661_v53  ;;  %v491_v51 = vmul.f32 %v2037_v4, %v471_v37 }
 0x109   :  { %v542_v16 = vmul.f32 %v2020_v59, %v2068_v26  ;;  %v543_v27 = vmul.f32 %v2020_v59, %v2085_v40  ;;  %v454_v41 = vadd.f32 %v438_v56, %v402_v39  ;;  %v594_v55 = vmul.f32 %v730_v36, %v2041_v5  ;;  %v577_v56 = vld [vmem:[#allocation2 + $0xc2] sm:$0xff] }
 0x10a   :  { %v714_v14 = vadd.f32 %v698_v13, %v662_v17  ;;  %v455_v45 = vadd.f32 %v439_v32, %v403_v63  ;;  %v765_v52 = vadd.f32 %v749_v47, %v713_v61  ;;  %v595_v44 = vmul.f32 %v2041_v5, %v575_v11 }
 0x10b   :  { %v647_v62 = vmul.f32 %v2028_v1, %v471_v37  ;;  %v699_v33 = vmul.f32 %v2024_v60, %v2085_v40  ;;  %v506_v26 = vadd.f32 %v490_v0, %v454_v41  ;;  %v353_v57 = vmul.f32 %v1987_v24, %v333_v58  ;;  %v630_v0 = vld [vmem:[#allocation2 + $0xd0] sm:$0xff] }
 0x10c   :  { %v766_v49 = vadd.f32 %v750_v30, %v714_v14  ;;  %v507_v31 = vadd.f32 %v491_v51, %v455_v45  ;;  %v788_v13 = vadd.f32 %v2140_v42, %v765_v52  ;;  %v751_v12 = vmul.f32 %v2033_v2, %v575_v11 }
 0x10d   :  { %v389_v36 = vmul.f32 %v1992_v28, %v2116_v48  ;;  %v492_v47 = vmul.f32 %v2037_v4, %v333_v58  ;;  %v558_v29 = vadd.f32 %v542_v16, %v506_v26  ;;  %v441_v38 = vmul.f32 %v2003_v34, %v421_v35 }
 0x10e   :  { %v789_v54 = vadd.f32 %v2140_v42, %v766_v49  ;;  %v559_v40 = vadd.f32 %v543_v27, %v507_v31  ;;  %v493_v37 = vmul.f32 %v2037_v4, %v473_v43  ;;  %v544_v30 = vmul.f32 %v2020_v59, %v2116_v48 }
 0x10f   :  { %v405_v18 = vadd.f32 %v389_v36, %v353_v57  ;;  %v508_v53 = vadd.f32 %v492_v47, %v2052_v10  ;;  %v804_v32 = vmax.f32 %v788_v13, 0.0  ;;  %v610_v39 = vadd.f32 %v594_v55, %v558_v29 }
 0x110   :  { %v805_v17 = vmax.f32 %v789_v54, 0.0  ;;  %v611_v63 = vadd.f32 %v595_v44, %v559_v40  ;;  %v545_v61 = vmul.f32 %v2020_v59, %v2125_v50  ;;  %v596_v16 = vmul.f32 %v2041_v5, %v421_v35  ;;  %v734_v35 = vld [vmem:[#allocation2 + $0xd2] sm:$0xff] }
 0x111   :  { %v457_v11 = vadd.f32 %v441_v38, %v405_v18  ;;  %v560_v51 = vadd.f32 %v544_v30, %v508_v53  ;;  %v663_v58 = vadd.f32 %v647_v62, %v610_v39  ;;  %v597_v14 = vmul.f32 %v2041_v5, %v577_v56 }
 0x112   :  { %v818_v27 = vpack.c.bf16 %v805_v17, %v804_v32  ;;  %v664_v10 = vadd.f32 %v2044_v7, %v611_v63  ;;  %v649_v45 = vmul.f32 %v2028_v1, %v473_v43  ;;  %v650_v55 = vmul.f32 %v2028_v1, %v630_v0 }
 0x113   :  { %v509_v48 = vadd.f32 %v493_v37, %v457_v11  ;;  %v612_v41 = vadd.f32 %v596_v16, %v560_v51  ;;  %v715_v52 = vadd.f32 %v699_v33, %v663_v58  ;;  %v701_v49 = vmul.f32 %v2024_v60, %v2125_v50 }
 0x114   :  { %1726 = vmatprep.mubr.bf16.mxu1 %v818_v27  ;;  %v716_v44 = vadd.f32 %v2047_v8, %v664_v10  ;;  %v702_v62 = vmul.f32 %v2024_v60, %v2113_v3  ;;  %v753_v31 = vmul.f32 %v2033_v2, %v577_v56  ;;  %v354_v57 = vmul.f32 %v473_v43, %v1987_v24  ;;  %v579_v27 = vld [vmem:[#allocation2 + $0xe2] sm:$0xff] }
 0x115   :  { %v561_v7 = vadd.f32 %v545_v61, %v509_v48  ;;  %v665_v26 = vadd.f32 %v649_v45, %v612_v41  ;;  %v767_v13 = vadd.f32 %v751_v12, %v715_v52  ;;  %v355_v33 = vmul.f32 %v630_v0, %v1987_v24 }
 0x116   :  { %v768_v36 = vadd.f32 %v2050_v9, %v716_v44  ;;  %v390_v8 = vmul.f32 %v1992_v28, %v2125_v50  ;;  %v754_v29 = vmul.f32 %v2033_v2, %v734_v35  ;;  %v391_v40 = vmul.f32 %v1992_v28, %v2113_v3  ;;  %v475_v9 = vld [vmem:[#allocation2 + $0xe0] sm:$0xff] }
 0x117   :  { %v613_v47 = vadd.f32 %v597_v14, %v561_v7  ;;  %v717_v54 = vadd.f32 %v701_v49, %v665_v26  ;;  %v790_v38 = vadd.f32 %v2140_v42, %v767_v13  ;;  %v442_v12 = vmul.f32 %v577_v56, %v2003_v34  ;;  %v632_v14 = vld [vmem:[#allocation2 + $0xf0] sm:$0xff] }
 0x118   :  { %v791_v18 = vadd.f32 %v2140_v42, %v768_v36  ;;  %v406_v43 = vadd.f32 %v390_v8, %v354_v57  ;;  %v407_v30 = vadd.f32 %v391_v40, %v355_v33  ;;  %v443_v50 = vmul.f32 %v734_v35, %v2003_v34  ;;  %v736_v57 = vld [vmem:[#allocation2 + $0xf2] sm:$0xff] }
 0x119   :  { %v666_v37 = vadd.f32 %v650_v55, %v613_v47  ;;  %v769_v53 = vadd.f32 %v753_v31, %v717_v54  ;;  %v806_v32 = vmax.f32 %v790_v38, 0.0  ;;  %v494_v63 = vmul.f32 %v630_v0, %v2037_v4 }
 0x11a   :  { %v807_v17 = vmax.f32 %v791_v18, 0.0  ;;  %v458_v39 = vadd.f32 %v442_v12, %v406_v43  ;;  %v459_v51 = vadd.f32 %v443_v50, %v407_v30  ;;  %v495_v16 = vmul.f32 %v2037_v4, %v475_v9  ;;  %v477_v18 = vld [vmem:[#allocation2 + $0x100] sm:$0xff]  ;;  %v528_v30 = vld [vmem:[#allocation2 + $0xf1] sm:$0xff] }
 0x11b   :  { %v718_v11 = vadd.f32 %v702_v62, %v666_v37  ;;  %v792_v61 = vadd.f32 %v2140_v42, %v769_v53  ;;  %v546_v10 = vmul.f32 %v2020_v59, %v2113_v3  ;;  %v547_v45 = vmul.f32 %v2020_v59, %v2120_v19  ;;  %v372_v62 = vld [vmem:[#allocation2 + $0xe1] sm:$0xff] }
 0x11c   :  { %v819_v58 = vpack.c.bf16 %v807_v17, %v806_v32  ;;  %v510_v56 = vadd.f32 %v494_v63, %v458_v39  ;;  %v511_v41 = vadd.f32 %v495_v16, %v459_v51  ;;  %v598_v0 = vmul.f32 %v734_v35, %v2041_v5  ;;  %v634_v51 = vld [vmem:[#allocation2 + $0x110] sm:$0xff] }
 0x11d   :  { %v770_v48 = vadd.f32 %v754_v29, %v718_v11  ;;  %v808_v55 = vmax.f32 %v792_v61, 0.0  ;;  %v599_v44 = vmul.f32 %v2041_v5, %v579_v27  ;;  %v651_v49 = vmul.f32 %v2028_v1, %v475_v9  ;;  %v581_v61 = vld [vmem:[#allocation2 + $0x102] sm:$0xff] }
 0x11e   :  { %1727 = vmatmul.mubr.bf16.gmra.mrb[4].mxu1 %v819_v58  ;;  %v562_v52 = vadd.f32 %v546_v10, %v510_v56  ;;  %v563_v26 = vadd.f32 %v547_v45, %v511_v41  ;;  %v652_v3 = vmul.f32 %v2028_v1, %v632_v14  ;;  %v703_v31 = vmul.f32 %v2024_v60, %v2120_v19  ;;  %v685_v41 = vld [vmem:[#allocation2 + $0x101] sm:$0xff]  ;;  %v686_v45 = vld [vmem:[#allocation2 + $0x111] sm:$0xff] }
 0x11f   :  { %v793_v7 = vadd.f32 %v2140_v42, %v770_v48  ;;  %v704_v35 = vmul.f32 %v2024_v60, %v2149_v15  ;;  %v356_v36 = vmul.f32 %v475_v9, %v1987_v24  ;;  %v357_v33 = vmul.f32 %v632_v14, %v1987_v24 }
 0x120   :  { %v614_v13 = vadd.f32 %v598_v0, %v562_v52  ;;  %v615_v47 = vadd.f32 %v599_v44, %v563_v26  ;;  %v392_v54 = vmul.f32 %v1992_v28, %v372_v62  ;;  %v393_v29 = vmul.f32 %v1992_v28, %v2149_v15 }
 0x121   :  { %v809_v8 = vmax.f32 %v793_v7, 0.0  ;;  %v444_v38 = vmul.f32 %v579_v27, %v2003_v34  ;;  %v445_v19 = vmul.f32 %v736_v57, %v2003_v34  ;;  %v496_v43 = vmul.f32 %v632_v14, %v2037_v4 }
 0x122   :  { %v667_v40 = vadd.f32 %v651_v49, %v614_v13  ;;  %v668_v37 = vadd.f32 %v652_v3, %v615_v47  ;;  %v408_v9 = vadd.f32 %v392_v54, %v356_v36  ;;  %v409_v53 = vadd.f32 %v393_v29, %v357_v33 }
 0x123   :  { %v820_v12 = vpack.c.bf16 %v809_v8, %v808_v55  ;;  %v755_v32 = vmul.f32 %v2033_v2, %v579_v27  ;;  %v756_v17 = vmul.f32 %v2033_v2, %v736_v57  ;;  %v497_v11 = vmul.f32 %v2037_v4, %v477_v18  ;;  %v479_v8 = vld [vmem:[#allocation2 + $0x120] sm:$0xff] }
 0x124   :  { %v719_v50 = vadd.f32 %v703_v31, %v667_v40  ;;  %v720_v15 = vadd.f32 %v704_v35, %v668_v37  ;;  %v460_v39 = vadd.f32 %v444_v38, %v408_v9  ;;  %v461_v63 = vadd.f32 %v445_v19, %v409_v53  ;;  %v636_v53 = vld [vmem:[#allocation2 + $0x130] sm:$0xff] }
 0x125   :  { %1730 = vmatprep.mubr.bf16.mxu1 %v820_v12  ;;  %v548_v58 = vmul.f32 %v2020_v59, %v528_v30  ;;  %v549_v56 = vmul.f32 %v2020_v59, %v253_v6  ;;  %v600_v48 = vmul.f32 %v736_v57, %v2041_v5  ;;  %v601_v55 = vmul.f32 %v2041_v5, %v581_v61  ;;  %v738_v6 = vld [vmem:[#allocation2 + $0x112] sm:$0xff] }
 0x126   :  { %v771_v16 = vadd.f32 %v755_v32, %v719_v50  ;;  %v772_v10 = vadd.f32 %v756_v17, %v720_v15  ;;  %v512_v14 = vadd.f32 %v496_v43, %v460_v39  ;;  %v513_v27 = vadd.f32 %v497_v11, %v461_v63  ;;  %v531_v43 = vld [vmem:[#allocation2 + $0x121] sm:$0xff] }
 0x127   :  { %v653_v52 = vmul.f32 %v2028_v1, %v477_v18  ;;  %v654_v44 = vmul.f32 %v2028_v1, %v634_v51  ;;  %v358_v7 = vmul.f32 %v477_v18, %v1987_v24  ;;  %v359_v3 = vmul.f32 %v634_v51, %v1987_v24  ;;  %v583_v17 = vld [vmem:[#allocation2 + $0x122] sm:$0xff] }
 0x128   :  { %v794_v0 = vadd.f32 %v2140_v42, %v771_v16  ;;  %v795_v49 = vadd.f32 %v2140_v42, %v772_v10  ;;  %v564_v23 = vadd.f32 %v548_v58, %v512_v14  ;;  %v565_v62 = vadd.f32 %v549_v56, %v513_v27 }
 0x129   :  { %v394_v31 = vmul.f32 %v685_v41, %v1992_v28  ;;  %v395_v57 = vmul.f32 %v686_v45, %v1992_v28  ;;  %v705_v33 = vmul.f32 %v2024_v60, %v685_v41  ;;  %v446_v29 = vmul.f32 %v581_v61, %v2003_v34  ;;  %v740_v41 = vld [vmem:[#allocation2 + $0x132] sm:$0xff] }
 0x12a   :  { %v810_v26 = vmax.f32 %v794_v0, 0.0  ;;  %v811_v13 = vmax.f32 %v795_v49, 0.0  ;;  %v616_v35 = vadd.f32 %v600_v48, %v564_v23  ;;  %v617_v36 = vadd.f32 %v601_v55, %v565_v62 }
 0x12b   :  { %v410_v47 = vadd.f32 %v394_v31, %v358_v7  ;;  %v411_v54 = vadd.f32 %v395_v57, %v359_v3  ;;  %v447_v40 = vmul.f32 %v738_v6, %v2003_v34  ;;  %v706_v24 = vmul.f32 %v2024_v60, %v686_v45 }
 0x12c   :  { %v821_v38 = vpack.c.bf16 %v811_v13, %v810_v26  ;;  %v669_v19 = vadd.f32 %v653_v52, %v616_v35  ;;  %v670_v18 = vadd.f32 %v654_v44, %v617_v36  ;;  %v498_v37 = vmul.f32 %v634_v51, %v2037_v4 }
 0x12d   :  { %v462_v12 = vadd.f32 %v446_v29, %v410_v47  ;;  %v463_v28 = vadd.f32 %v447_v40, %v411_v54  ;;  %v499_v9 = vmul.f32 %v2037_v4, %v479_v8  ;;  %v757_v32 = vmul.f32 %v2033_v2, %v581_v61  ;;  %v688_v4 = vld [vmem:[#allocation2 + $0x131] sm:$0xff]  ;;  %v1781_v47 = vld [vmem:[%s2508_s9 + $0x20] sm:$0xff]   ;;  %v1782_v54 = vld [vmem:[%s2508_s9 + $0x28] sm:$0xff]  }
 0x12e   :  { %1731 = vmatmul.mubr.bf16.gmra.mrb[8].mxu1 %v821_v38  ;;  %v721_v30 = vadd.f32 %v705_v33, %v669_v19  ;;  %v722_v50 = vadd.f32 %v706_v24, %v670_v18  ;;  %v758_v34 = vmul.f32 %v2033_v2, %v738_v6  ;;  %v550_v63 = vmul.f32 %v686_v45, %v2020_v59  ;;  %v1783_v29 = vld [vmem:[%s2508_s9 + $0x30] sm:$0xff]   ;;  %v1784_v40 = vld [vmem:[%s2508_s9 + $0x38] sm:$0xff]   ;;  %v2334_v38 = vld [vmem:[%s2509_s6] ss:$0 sm:$0xff] }
 0x12f   :  { %v514_v15 = vadd.f32 %v498_v37, %v462_v12  ;;  %v515_v39 = vadd.f32 %v499_v9, %v463_v28  ;;  %v551_v11 = vmul.f32 %v2020_v59, %v531_v43  ;;  %v656_v51 = vmul.f32 %v2028_v1, %v636_v53 }
 0x130   :  { %v773_v16 = vadd.f32 %v757_v32, %v721_v30  ;;  %v774_v58 = vadd.f32 %v758_v34, %v722_v50  ;;  %v602_v14 = vmul.f32 %v738_v6, %v2041_v5  ;;  %v603_v61 = vmul.f32 %v2041_v5, %v583_v17  ;;  %v2343_v34 = vld [vmem:[%s2510_s7] sm:$0xff] }
 0x131   :  { %v566_v56 = vadd.f32 %v550_v63, %v514_v15  ;;  %v567_v10 = vadd.f32 %v551_v11, %v515_v39  ;;  %v655_v59 = vmul.f32 %v2028_v1, %v479_v8  ;;  %v708_v55 = vmul.f32 %v2024_v60, %v688_v4  ;;  %v1778_v8 = vld [vmem:[%s2508_s9 + $0x8] sm:$0xff]   ;;  %v1076_v39 = vld [vmem:[#allocation3] ss:$2 sm:$0xf] }
 0x132   :  { %v796_v27 = vadd.f32 %v2140_v42, %v773_v16  ;;  %v797_v48 = vadd.f32 %v2140_v42, %v774_v58  ;;  %v707_v62 = vmul.f32 %v2024_v60, %v531_v43  ;;  %v760_v6 = vmul.f32 %v2033_v2, %v740_v41  ;;  %v1777_v60 = vld [vmem:[%s2508_s9] sm:$0xff]  }
 0x133   :  { %v618_v0 = vadd.f32 %v602_v14, %v566_v56  ;;  %v619_v45 = vadd.f32 %v603_v61, %v567_v10  ;;  %v759_v3 = vmul.f32 %v2033_v2, %v583_v17  ;;  %1738 = vmatprep.subr.bf16.mxu0 %v1777_v60  ;;  %v1779_v2 = vld [vmem:[%s2508_s9 + $0x10] sm:$0xff]   ;;  %v2348_v17 = vrot.slane %v2343_v34, %v342_v21  ;;  %v1104_v63 = vld [vmem:[#allocation3 + $0x1] ss:$2 sm:$0xf] }
 0x134   :  { %v812_v52 = vmax.f32 %v796_v27, 0.0  ;;  %v813_v44 = vmax.f32 %v797_v48, 0.0  ;;  %1739 = vmatpush3.bf16.msra.mxu0 %v1777_v60  ;;  %v2353_v15 = vrot.slane %v2343_v34, %v378_v22  ;;  %v2362_v21 = vrot.slane %v2343_v34, %v430_v25  ;;  %v1140_v10 = vld [vmem:[#allocation3 + $0x2] ss:$2 sm:$0xf] }
 0x135   :  { %v671_v49 = vadd.f32 %v655_v59, %v618_v0  ;;  %v672_v23 = vadd.f32 %v656_v51, %v619_v45  ;;  %1740 = vmatprep.subr.bf16.mxu0 %v1778_v8  ;;  %v1095_v4 = vmul.f32 %v2348_v17, %v1076_v39  ;;  %v2369_v0 = vrot.slane %v2343_v34, %v482_v46 }
 0x136   :  { %v822_v5 = vpack.c.bf16 %v813_v44, %v812_v52  ;;  %v1123_v56 = vmul.f32 %v2353_v15, %v1104_v63  ;;  %v1159_v27 = vmul.f32 %v2362_v21, %v1140_v10 }
 0x137   :  { %v723_v7 = vadd.f32 %v707_v62, %v671_v49  ;;  %v724_v26 = vadd.f32 %v708_v55, %v672_v23 }
 0x138   :  { %1734 = vmatprep.mubr.bf16.mxu1 %v822_v5  ;;  %1741 = vmatpush3.bf16.msra.mxu0 %v1778_v8  ;;  %v1131_v61 = vadd.f32 %v1123_v56, %v1095_v4  ;;  %v2521_v56 = vsub.s32 7, %v1978_v20 }
 0x139   :  { %v775_v31 = vadd.f32 %v759_v3, %v723_v7  ;;  %v776_v57 = vadd.f32 %v760_v6, %v724_v26  ;;  %1742 = vmatprep.subr.bf16.mxu0 %v1779_v2  ;;  %v2518_v6 = vsub.s32 4, %v1978_v20 }
 0x13a   :  { %v1167_v62 = vadd.f32 %v1159_v27, %v1131_v61  ;;  %v2402_v10 = vrot.slane %v2343_v34, %v2521_v56 }
 0x13b   :  { %v798_v1 = vadd.f32 %v2140_v42, %v775_v31  ;;  %v799_v13 = vadd.f32 %v2140_v42, %v776_v57  ;;  %v1780_v42 = vld [vmem:[%s2508_s9 + $0x18] sm:$0xff]   ;;  %v2376_v5 = vrot.slane %v2343_v34, %v2518_v6 }
 0x13c   :  { %1743 = vmatpush3.bf16.msra.mxu0 %v1779_v2 }
 0x13d   :  { %v814_v35 = vmax.f32 %v798_v1, 0.0  ;;  %v815_v36 = vmax.f32 %v799_v13, 0.0  ;;  %1744 = vmatprep.subr.bf16.mxu0 %v1780_v42 }
 0x13f   :  { %v823_v33 = vpack.c.bf16 %v815_v36, %v814_v35 }
 0x140   :  { %1745 = vmatpush3.bf16.msra.mxu0 %v1780_v42 }
 0x141   :  { %1735 = vmatmul.mubr.bf16.gmra.mrb[12].mxu1 %v823_v33  ;;  %1746 = vmatprep.subr.bf16.mxu0 %v1781_v47 }
 0x144   :  { %1747 = vmatpush3.bf16.msra.mxu0 %v1781_v47 }
 0x145   :  { %1748 = vmatprep.subr.bf16.mxu0 %v1782_v54 }
 0x148   :  { %1749 = vmatpush3.bf16.msra.mxu0 %v1782_v54 }
 0x149   :  { %1750 = vmatprep.subr.bf16.mxu0 %v1783_v29 }
 0x14c   :  { %1751 = vmatpush3.bf16.msra.mxu0 %v1783_v29  ;;  %v2519_v29 = vsub.s32 5, %v1978_v20 }
 0x14d   :  { %1752 = vmatprep.subr.bf16.mxu0 %v1784_v40 }
 0x150   :  { %1753 = vmatpush3.bf16.msra.mxu0 %v1784_v40  ;;  %v2388_v40 = vrot.slane %v2343_v34, %v2519_v29 }
 0x1da   :  { %v1724_v19 = vpop.f32.mrb[0].mxu1 }
 0x1db   :  { %v938_v18 = vadd.f32 %v1724_v19, %v2334_v38  ;;  %v929_v24 = vpop.f32.mrb[1].mxu1 }
 0x1dc   :  { %v930_v43 = vadd.f32 %v2334_v38, %v929_v24  ;;  %v1725_v12 = vpop.f32.mrb[2].mxu1 }
 0x1dd   :  { %v994_v28 = vmax.f32 %v938_v18, 0.0  ;;  %v941_v37 = vadd.f32 %v1725_v12, %v2334_v38  ;;  %v932_v9 = vpop.f32.mrb[3].mxu1 }
 0x1de   :  { %v992_v53 = vmax.f32 %v930_v43, 0.0  ;;  %v933_v30 = vadd.f32 %v2334_v38, %v932_v9 }
 0x1df   :  { %1060 = vst [vmem:[#allocation3 + $0x31] sm:$0xff] %v994_v28  ;;  %v995_v50 = vmax.f32 %v941_v37, 0.0 }
 0x1e0   :  { %1058 = vst [vmem:[#allocation3 + $0x11] sm:$0xff] %v992_v53  ;;  %v993_v32 = vmax.f32 %v933_v30, 0.0 }
 0x1e1   :  { %1061 = vst [vmem:[#allocation3 + $0x41] sm:$0xff] %v995_v50  ;;  %v2520_v50 = vsub.s32 6, %v1978_v20 }
 0x1e2   :  { %1059 = vst [vmem:[#allocation3 + $0x21] sm:$0xff] %v993_v32 }
 0x1e3   :  { %v2395_v32 = vrot.slane %v2343_v34, %v2520_v50 }
 0x1e6   :  { %v1177_v41 = vld [vmem:[#allocation3 + $0x30] ss:$2 sm:$0xf]  ;;  %v1213_v35 = vld [vmem:[#allocation3 + $0x31] ss:$2 sm:$0xf] }
 0x1e7   :  { %v1175_v59 = vld [vmem:[#allocation3 + $0x10] ss:$2 sm:$0xf]  ;;  %v1195_v57 = vmul.f32 %v2369_v0, %v1177_v41  ;;  %v1211_v42 = vld [vmem:[#allocation3 + $0x11] ss:$2 sm:$0xf]  ;;  %v1231_v54 = vmul.f32 %v2376_v5, %v1213_v35 }
 0x1e8   :  { %v1080_v23 = vld [vmem:[#allocation3 + $0x40] ss:$2 sm:$0xf]  ;;  %v1108_v3 = vld [vmem:[#allocation3 + $0x41] ss:$2 sm:$0xf]  ;;  %v1194_v31 = vmul.f32 %v2369_v0, %v1175_v59  ;;  %v1230_v24 = vmul.f32 %v2376_v5, %v1211_v42 }
 0x1e9   :  { %v1078_v11 = vld [vmem:[#allocation3 + $0x20] ss:$2 sm:$0xf]  ;;  %v1106_v16 = vld [vmem:[#allocation3 + $0x21] ss:$2 sm:$0xf]  ;;  %v1097_v8 = vmul.f32 %v2348_v17, %v1080_v23  ;;  %v1125_v2 = vmul.f32 %v2353_v15, %v1108_v3 }
 0x1ea   :  { %v1096_v58 = vmul.f32 %v2348_v17, %v1078_v11  ;;  %v1124_v51 = vmul.f32 %v2353_v15, %v1106_v16  ;;  %v1142_v22 = vld [vmem:[#allocation3 + $0x22] ss:$2 sm:$0xf]  ;;  %v1202_v47 = vadd.f32 %v1194_v31, %v1167_v62  ;;  %v1249_v19 = vld [vmem:[#allocation3 + $0x32] ss:$2 sm:$0xf] }
 0x1eb   :  { %v1160_v48 = vmul.f32 %v2362_v21, %v1142_v22  ;;  %v1144_v18 = vld [vmem:[#allocation3 + $0x42] ss:$2 sm:$0xf]  ;;  %v1133_v12 = vadd.f32 %v1125_v2, %v1097_v8  ;;  %v1247_v28 = vld [vmem:[#allocation3 + $0x12] ss:$2 sm:$0xf]  ;;  %v1267_v9 = vmul.f32 %v2388_v40, %v1249_v19 }
 0x1ec   :  { %v1132_v14 = vadd.f32 %v1124_v51, %v1096_v58  ;;  %v1238_v37 = vadd.f32 %v1230_v24, %v1202_v47  ;;  %v1283_v53 = vld [vmem:[#allocation3 + $0x20] ss:$2 sm:$0xf]  ;;  %v1161_v39 = vmul.f32 %v2362_v21, %v1144_v18  ;;  %v1319_v63 = vld [vmem:[#allocation3 + $0x21] ss:$2 sm:$0xf]  ;;  %v1266_v51 = vmul.f32 %v2388_v40, %v1247_v28 }
 0x1ed   :  { %v1285_v30 = vld [vmem:[#allocation3 + $0x40] ss:$2 sm:$0xf]  ;;  %v1321_v11 = vld [vmem:[#allocation3 + $0x41] ss:$2 sm:$0xf]  ;;  %v1302_v59 = vmul.f32 %v2395_v32, %v1283_v53 }
 0x1ee   :  { %v1168_v52 = vadd.f32 %v1160_v48, %v1132_v14  ;;  %v1169_v22 = vadd.f32 %v1161_v39, %v1133_v12  ;;  %v1355_v18 = vld [vmem:[#allocation3 + $0x22] ss:$2 sm:$0xf] }
 0x1ef   :  { %v1357_v24 = vld [vmem:[#allocation3 + $0x42] ss:$2 sm:$0xf] }
 0x1f0   :  { %v1203_v33 = vadd.f32 %v1195_v57, %v1168_v52  ;;  %v2423_v28 = vld [vmem:[%s2510_s7 + $0x8] ss:$0 sm:$0xff] }
 0x1f1   :  { %v1728_v45 = vpop.f32.mrb[4].mxu1 }
 0x1f2   :  { %v954_v55 = vadd.f32 %v1728_v45, %v2334_v38  ;;  %v945_v25 = vpop.f32.mrb[5].mxu1  ;;  %v1239_v43 = vadd.f32 %v1231_v54, %v1203_v33  ;;  %v1274_v45 = vadd.f32 %v1266_v51, %v1238_v37 }
 0x1f3   :  { %v946_v44 = vadd.f32 %v2334_v38, %v945_v25  ;;  %v1729_v49 = vpop.f32.mrb[6].mxu1 }
 0x1f4   :  { %v998_v7 = vmax.f32 %v954_v55, 0.0  ;;  %v957_v46 = vadd.f32 %v1729_v49, %v2334_v38  ;;  %v948_v26 = vpop.f32.mrb[7].mxu1  ;;  %v1275_v4 = vadd.f32 %v1267_v9, %v1239_v43  ;;  %v1303_v55 = vmul.f32 %v2395_v32, %v1285_v30 }
 0x1f5   :  { %v996_v1 = vmax.f32 %v946_v44, 0.0  ;;  %v949_v13 = vadd.f32 %v2334_v38, %v948_v26  ;;  %v1310_v8 = vadd.f32 %v1302_v59, %v1274_v45 }
 0x1f6   :  { %1064 = vst [vmem:[#allocation3 + $0x71] sm:$0xff] %v998_v7  ;;  %v999_v36 = vmax.f32 %v957_v46, 0.0  ;;  %v1311_v6 = vadd.f32 %v1303_v55, %v1275_v4  ;;  %v1338_v7 = vmul.f32 %v2402_v10, %v1319_v63  ;;  %v1339_v46 = vmul.f32 %v2402_v10, %v1321_v11  ;;  %v1084_v55 = vld [vmem:[#allocation3 + $0xa0] ss:$2 sm:$0xf] }
 0x1f7   :  { %1062 = vst [vmem:[#allocation3 + $0x51] sm:$0xff] %v996_v1  ;;  %v997_v60 = vmax.f32 %v949_v13, 0.0 }
 0x1f8   :  { %1065 = vst [vmem:[#allocation3 + $0x81] sm:$0xff] %v999_v36  ;;  %v1347_v53 = vadd.f32 %v1339_v46, %v1311_v6 }
 0x1f9   :  { %1063 = vst [vmem:[#allocation3 + $0x61] sm:$0xff] %v997_v60 }
 0x1fd   :  { %v1181_v14 = vld [vmem:[#allocation3 + $0x70] ss:$2 sm:$0xf]  ;;  %v1217_v1 = vld [vmem:[#allocation3 + $0x71] ss:$2 sm:$0xf] }
 0x1fe   :  { %v1179_v16 = vld [vmem:[#allocation3 + $0x50] ss:$2 sm:$0xf]  ;;  %v1215_v58 = vld [vmem:[#allocation3 + $0x51] ss:$2 sm:$0xf]  ;;  %v1197_v33 = vmul.f32 %v2369_v0, %v1181_v14  ;;  %v1233_v37 = vmul.f32 %v2376_v5, %v1217_v1  ;;  %v1375_v14 = vmul.f32 %v2423_v28, %v1357_v24 }
 0x1ff   :  { %v1196_v61 = vmul.f32 %v2369_v0, %v1179_v16  ;;  %v1251_v27 = vld [vmem:[#allocation3 + $0x52] ss:$2 sm:$0xf]  ;;  %v1232_v34 = vmul.f32 %v2376_v5, %v1215_v58  ;;  %v1289_v39 = vld [vmem:[#allocation3 + $0x80] ss:$2 sm:$0xf]  ;;  %v1346_v58 = vadd.f32 %v1338_v7, %v1310_v8 }
 0x200   :  { %v1082_v48 = vld [vmem:[#allocation3 + $0x60] ss:$2 sm:$0xf]  ;;  %v1110_v41 = vld [vmem:[#allocation3 + $0x61] ss:$2 sm:$0xf]  ;;  %v1268_v62 = vmul.f32 %v2388_v40, %v1251_v27  ;;  %v1374_v27 = vmul.f32 %v2423_v28, %v1355_v18  ;;  %v1383_v59 = vadd.f32 %v1375_v14, %v1347_v53 }
 0x201   :  { %v1098_v25 = vmul.f32 %v2348_v17, %v1082_v48  ;;  %v1126_v52 = vmul.f32 %v2353_v15, %v1110_v41  ;;  %v1146_v20 = vld [vmem:[#allocation3 + $0x62] ss:$2 sm:$0xf]  ;;  %v1204_v44 = vadd.f32 %v1196_v61, %v1169_v22  ;;  %v1732_v23 = vpop.f32.mrb[8].mxu1  ;;  %v1305_v41 = vmul.f32 %v2395_v32, %v1289_v39 }
 0x202   :  { %v1287_v49 = vld [vmem:[#allocation3 + $0x60] ss:$2 sm:$0xf]  ;;  %v970_v26 = vadd.f32 %v1732_v23, %v2334_v38  ;;  %v961_v3 = vpop.f32.mrb[9].mxu1  ;;  %v1162_v57 = vmul.f32 %v2362_v21, %v1146_v20 }
 0x203   :  { %v1134_v31 = vadd.f32 %v1126_v52, %v1098_v25  ;;  %v1240_v13 = vadd.f32 %v1232_v34, %v1204_v44  ;;  %v962_v35 = vadd.f32 %v2334_v38, %v961_v3  ;;  %v1733_v36 = vpop.f32.mrb[10].mxu1  ;;  %v1304_v60 = vmul.f32 %v2395_v32, %v1287_v49  ;;  %v1323_v2 = vld [vmem:[#allocation3 + $0x61] ss:$2 sm:$0xf]  ;;  %v2436_v23 = vld [vmem:[%s2511_s8] ss:$0 sm:$0xff] }
 0x204   :  { %v1002_v42 = vmax.f32 %v970_v26, 0.0  ;;  %v973_v47 = vadd.f32 %v1733_v36, %v2334_v38  ;;  %v964_v54 = vpop.f32.mrb[11].mxu1  ;;  %v1253_v9 = vld [vmem:[#allocation3 + $0x72] ss:$2 sm:$0xf]  ;;  %v1340_v11 = vmul.f32 %v2402_v10, %v1323_v2  ;;  %v1382_v52 = vadd.f32 %v1374_v27, %v1346_v58 }
 0x205   :  { %v1170_v29 = vadd.f32 %v1162_v57, %v1134_v31  ;;  %v1276_v19 = vadd.f32 %v1268_v62, %v1240_v13  ;;  %v1000_v43 = vmax.f32 %v962_v35, 0.0  ;;  %v965_v12 = vadd.f32 %v2334_v38, %v964_v54  ;;  %v1359_v51 = vld [vmem:[#allocation3 + $0x62] ss:$2 sm:$0xf] }
 0x206   :  { %1068 = vst [vmem:[#allocation3 + $0xd1] sm:$0xff] %v1002_v42  ;;  %v1003_v30 = vmax.f32 %v973_v47, 0.0  ;;  %v1269_v56 = vmul.f32 %v2388_v40, %v1253_v9  ;;  %v1325_v61 = vld [vmem:[#allocation3 + $0x81] ss:$2 sm:$0xf]  ;;  %v1376_v45 = vmul.f32 %v2423_v28, %v1359_v51  ;;  %v1099_v62 = vmul.f32 %v2348_v17, %v1084_v55 }
 0x207   :  { %v1205_v50 = vadd.f32 %v1197_v33, %v1170_v29  ;;  %v1312_v63 = vadd.f32 %v1304_v60, %v1276_v19  ;;  %1066 = vst [vmem:[#allocation3 + $0xb1] sm:$0xff] %v1000_v43  ;;  %v1001_v16 = vmax.f32 %v965_v12, 0.0  ;;  %v1361_v25 = vld [vmem:[#allocation3 + $0x82] ss:$2 sm:$0xf]  ;;  %v1341_v34 = vmul.f32 %v2402_v10, %v1325_v61 }
 0x208   :  { %1069 = vst [vmem:[#allocation3 + $0xe1] sm:$0xff] %v1003_v30  ;;  %v1112_v20 = vld [vmem:[#allocation3 + $0xa1] ss:$2 sm:$0xf]  ;;  %v1377_v7 = vmul.f32 %v2423_v28, %v1361_v25  ;;  %v1398_v46 = vadd.f32 %v2436_v23, %v1383_v59  ;;  %v1397_v3 = vadd.f32 %v2436_v23, %v1382_v52 }
 0x209   :  { %v1241_v4 = vadd.f32 %v1233_v37, %v1205_v50  ;;  %v1348_v22 = vadd.f32 %v1340_v11, %v1312_v63  ;;  %1067 = vst [vmem:[#allocation3 + $0xc1] sm:$0xff] %v1001_v16  ;;  %v1127_v26 = vmul.f32 %v2353_v15, %v1112_v20  ;;  %v1148_v31 = vld [vmem:[#allocation3 + $0xa2] ss:$2 sm:$0xf] }
 0x20a   :  { %v1406_v2 = vmax.f32 %v1398_v46, 0.0  ;;  %v1163_v47 = vmul.f32 %v2362_v21, %v1148_v31  ;;  %v1405_v54 = vmax.f32 %v1397_v3, 0.0 }
 0x20b   :  { %v1277_v48 = vadd.f32 %v1269_v56, %v1241_v4  ;;  %v1384_v49 = vadd.f32 %v1376_v45, %v1348_v22  ;;  %v1135_v42 = vadd.f32 %v1127_v26, %v1099_v62 }
 0x20c   :  { %v1421_v11 = vcombine.low %v1405_v54, %v1406_v2 }
 0x20d   :  { %v1313_v44 = vadd.f32 %v1305_v41, %v1277_v48  ;;  %v1399_v35 = vadd.f32 %v2436_v23, %v1384_v49  ;;  %v1185_v18 = vld [vmem:[#allocation3 + $0xd0] ss:$2 sm:$0xf]  ;;  %v1171_v58 = vadd.f32 %v1163_v47, %v1135_v42  ;;  %v1221_v45 = vld [vmem:[#allocation3 + $0xd1] ss:$2 sm:$0xf] }
 0x20e   :  { %v1183_v37 = vld [vmem:[#allocation3 + $0xb0] ss:$2 sm:$0xf]  ;;  %v1199_v61 = vmul.f32 %v2369_v0, %v1185_v18  ;;  %v1235_v49 = vmul.f32 %v2376_v5, %v1221_v45 }
 0x20f   :  { %v1349_v6 = vadd.f32 %v1341_v34, %v1313_v44  ;;  %v1407_v43 = vmax.f32 %v1399_v35, 0.0  ;;  %v1088_v50 = vld [vmem:[#allocation3 + $0xe0] ss:$2 sm:$0xf]  ;;  %v1198_v14 = vmul.f32 %v2369_v0, %v1183_v37 }
 0x210   :  { %v1086_v57 = vld [vmem:[#allocation3 + $0xc0] ss:$2 sm:$0xf]  ;;  %v1114_v1 = vld [vmem:[#allocation3 + $0xc1] ss:$2 sm:$0xf]  ;;  %v1101_v52 = vmul.f32 %v2348_v17, %v1088_v50 }
 0x211   :  { %v1385_v13 = vadd.f32 %v1377_v7, %v1349_v6  ;;  %v1100_v36 = vmul.f32 %v2348_v17, %v1086_v57  ;;  %v1128_v33 = vmul.f32 %v2353_v15, %v1114_v1  ;;  %v1150_v60 = vld [vmem:[#allocation3 + $0xc2] ss:$2 sm:$0xf]  ;;  %v1116_v51 = vld [vmem:[#allocation3 + $0xe1] ss:$2 sm:$0xf]  ;;  %v1206_v34 = vadd.f32 %v1198_v14, %v1171_v58 }
 0x212   :  { %v1164_v19 = vmul.f32 %v2362_v21, %v1150_v60  ;;  %v1129_v20 = vmul.f32 %v2353_v15, %v1116_v51  ;;  %v1219_v44 = vld [vmem:[#allocation3 + $0xb1] ss:$2 sm:$0xf]  ;;  %v1257_v62 = vld [vmem:[#allocation3 + $0xd2] ss:$2 sm:$0xf] }
 0x213   :  { %v1400_v8 = vadd.f32 %v2436_v23, %v1385_v13  ;;  %v1136_v29 = vadd.f32 %v1128_v33, %v1100_v36  ;;  %v1234_v6 = vmul.f32 %v2376_v5, %v1219_v44  ;;  %v1255_v26 = vld [vmem:[#allocation3 + $0xb2] ss:$2 sm:$0xf]  ;;  %v1271_v31 = vmul.f32 %v2388_v40, %v1257_v62  ;;  %v1293_v1 = vld [vmem:[#allocation3 + $0xe0] ss:$2 sm:$0xf] }
 0x214   :  { %v1736_v24 = vpop.f32.mrb[12].mxu1  ;;  %v1137_v46 = vadd.f32 %v1129_v20, %v1101_v52  ;;  %v1270_v36 = vmul.f32 %v2388_v40, %v1255_v26  ;;  %v1291_v42 = vld [vmem:[#allocation3 + $0xc0] ss:$2 sm:$0xf] }
 0x215   :  { %v1408_v12 = vmax.f32 %v1400_v8, 0.0  ;;  %v986_v9 = vadd.f32 %v1736_v24, %v2334_v38  ;;  %v977_v53 = vpop.f32.mrb[13].mxu1  ;;  %v1172_v30 = vadd.f32 %v1164_v19, %v1136_v29  ;;  %v1242_v3 = vadd.f32 %v1234_v6, %v1206_v34  ;;  %v1327_v51 = vld [vmem:[#allocation3 + $0xc1] ss:$2 sm:$0xf] }
 0x216   :  { %v978_v39 = vadd.f32 %v2334_v38, %v977_v53  ;;  %v1737_v63 = vpop.f32.mrb[14].mxu1  ;;  %v1307_v19 = vmul.f32 %v2395_v32, %v1293_v1  ;;  %v1306_v50 = vmul.f32 %v2395_v32, %v1291_v42  ;;  %v1342_v45 = vmul.f32 %v2402_v10, %v1327_v51  ;;  %v1363_v20 = vld [vmem:[#allocation3 + $0xc2] ss:$2 sm:$0xf] }
 0x217   :  { %v1422_v16 = vcombine.low %v1407_v43, %v1408_v12  ;;  %v1006_v4 = vmax.f32 %v986_v9, 0.0  ;;  %v989_v56 = vadd.f32 %v1737_v63, %v2334_v38  ;;  %v980_v22 = vpop.f32.mrb[15].mxu1  ;;  %v1207_v55 = vadd.f32 %v1199_v61, %v1172_v30  ;;  %v1329_v9 = vld [vmem:[#allocation3 + $0xe1] ss:$2 sm:$0xf] }
 0x218   :  { %v1004_v27 = vmax.f32 %v978_v39, 0.0  ;;  %v981_v48 = vadd.f32 %v2334_v38, %v980_v22  ;;  %v1152_v38 = vld [vmem:[#allocation3 + $0xe2] ss:$2 sm:$0xf]  ;;  %v1278_v29 = vadd.f32 %v1270_v36, %v1242_v3 }
 0x219   :  { %v1429_v41 = vpack.c.bf16 %v1422_v16, %v1421_v11  ;;  %1072 = vst [vmem:[#allocation3 + $0x111] sm:$0xff] %v1006_v4  ;;  %v1007_v59 = vmax.f32 %v989_v56, 0.0  ;;  %v1243_v7 = vadd.f32 %v1235_v49, %v1207_v55  ;;  %v1165_v57 = vmul.f32 %v2362_v21, %v1152_v38 }
 0x21a   :  { %1070 = vst [vmem:[#allocation3 + $0xf1] sm:$0xff] %v1004_v27  ;;  %v1005_v25 = vmax.f32 %v981_v48, 0.0  ;;  %v1314_v4 = vadd.f32 %v1306_v50, %v1278_v29  ;;  %v1343_v56 = vmul.f32 %v2402_v10, %v1329_v9  ;;  %v1365_v48 = vld [vmem:[#allocation3 + $0xe2] ss:$2 sm:$0xf] }
 0x21b   :  { %1754 = vmatprep.mubr.bf16.mxu0 %v1429_v41  ;;  %1073 = vst [vmem:[#allocation3 + $0x121] sm:$0xff] %v1007_v59  ;;  %v1279_v33 = vadd.f32 %v1271_v31, %v1243_v7  ;;  %v1173_v60 = vadd.f32 %v1165_v57, %v1137_v46  ;;  %v1379_v49 = vmul.f32 %v2423_v28, %v1365_v48 }
 0x21c   :  { %1071 = vst [vmem:[#allocation3 + $0x101] sm:$0xff] %v1005_v25  ;;  %v1350_v38 = vadd.f32 %v1342_v45, %v1314_v4  ;;  %v1378_v46 = vmul.f32 %v2423_v28, %v1363_v20 }
 0x21d   :  { %v1315_v39 = vadd.f32 %v1307_v19, %v1279_v33 }
 0x220   :  { %v1189_v53 = vld [vmem:[#allocation3 + $0x110] ss:$2 sm:$0xf] }
 0x221   :  { %v1187_v13 = vld [vmem:[#allocation3 + $0xf0] ss:$2 sm:$0xf]  ;;  %v1223_v35 = vld [vmem:[#allocation3 + $0xf1] ss:$2 sm:$0xf]  ;;  %v1201_v14 = vmul.f32 %v2369_v0, %v1189_v53 }
 0x222   :  { %v1200_v8 = vmul.f32 %v2369_v0, %v1187_v13  ;;  %v1259_v2 = vld [vmem:[#allocation3 + $0xf2] ss:$2 sm:$0xf]  ;;  %v1236_v37 = vmul.f32 %v2376_v5, %v1223_v35  ;;  %v1297_v44 = vld [vmem:[#allocation3 + $0x120] ss:$2 sm:$0xf]  ;;  %v1386_v35 = vadd.f32 %v1378_v46, %v1350_v38 }
 0x223   :  { %v1090_v47 = vld [vmem:[#allocation3 + $0x100] ss:$2 sm:$0xf]  ;;  %v1118_v54 = vld [vmem:[#allocation3 + $0x101] ss:$2 sm:$0xf]  ;;  %v1272_v58 = vmul.f32 %v2388_v40, %v1259_v2  ;;  %v1309_v3 = vmul.f32 %v2395_v32, %v1297_v44 }
 0x224   :  { %v1102_v18 = vmul.f32 %v2348_v17, %v1090_v47  ;;  %v1130_v24 = vmul.f32 %v2353_v15, %v1118_v54  ;;  %v1154_v43 = vld [vmem:[#allocation3 + $0x102] ss:$2 sm:$0xf]  ;;  %v1208_v12 = vadd.f32 %v1200_v8, %v1173_v60  ;;  %v1225_v17 = vld [vmem:[#allocation3 + $0x111] ss:$2 sm:$0xf]  ;;  %v1401_v2 = vadd.f32 %v2436_v23, %v1386_v35 }
 0x225   :  { %v1295_v30 = vld [vmem:[#allocation3 + $0x100] ss:$2 sm:$0xf]  ;;  %v1166_v11 = vmul.f32 %v2362_v21, %v1154_v43  ;;  %v1331_v15 = vld [vmem:[#allocation3 + $0x101] ss:$2 sm:$0xf]  ;;  %v1351_v21 = vadd.f32 %v1343_v56, %v1315_v39  ;;  %v1237_v55 = vmul.f32 %v2376_v5, %v1225_v17 }
 0x226   :  { %v1138_v63 = vadd.f32 %v1130_v24, %v1102_v18  ;;  %v1244_v16 = vadd.f32 %v1236_v37, %v1208_v12  ;;  %v1308_v27 = vmul.f32 %v2395_v32, %v1295_v30  ;;  %v1261_v41 = vld [vmem:[#allocation3 + $0x112] ss:$2 sm:$0xf]  ;;  %v1344_v52 = vmul.f32 %v2402_v10, %v1331_v15  ;;  %v1367_v34 = vld [vmem:[#allocation3 + $0x102] ss:$2 sm:$0xf] }
 0x227   :  { %v1273_v62 = vmul.f32 %v2388_v40, %v1261_v41  ;;  %v1333_v7 = vld [vmem:[#allocation3 + $0x121] ss:$2 sm:$0xf]  ;;  %v1380_v5 = vmul.f32 %v2423_v28, %v1367_v34  ;;  %v1387_v31 = vadd.f32 %v1379_v49, %v1351_v21  ;;  %v1369_v57 = vld [vmem:[#allocation3 + $0x122] ss:$2 sm:$0xf] }
 0x228   :  { %v1174_v22 = vadd.f32 %v1166_v11, %v1138_v63  ;;  %v1280_v61 = vadd.f32 %v1272_v58, %v1244_v16  ;;  %v1345_v13 = vmul.f32 %v2402_v10, %v1333_v7  ;;  %v1381_v40 = vmul.f32 %v2423_v28, %v1369_v57  ;;  %v1641_v28 = vld [vmem:[%s2512_s10] ss:$0 sm:$0xff] }
 0x229   :  { %v1402_v60 = vadd.f32 %v2436_v23, %v1387_v31  ;;  %v1409_v54 = vmax.f32 %v1401_v2, 0.0 }
 0x22a   :  { %v1209_v59 = vadd.f32 %v1201_v14, %v1174_v22  ;;  %v1316_v25 = vadd.f32 %v1308_v27, %v1280_v61 }
 0x22b   :  { %v1410_v47 = vmax.f32 %v1402_v60, 0.0 }
 0x22c   :  { %v1245_v0 = vadd.f32 %v1237_v55, %v1209_v59  ;;  %v1352_v6 = vadd.f32 %v1344_v52, %v1316_v25 }
 0x22d   :  { %v1423_v18 = vcombine.low %v1409_v54, %v1410_v47 }
 0x22e   :  { %v1281_v26 = vadd.f32 %v1273_v62, %v1245_v0  ;;  %v1388_v36 = vadd.f32 %v1380_v5, %v1352_v6 }
 0x230   :  { %v1317_v1 = vadd.f32 %v1309_v3, %v1281_v26  ;;  %v1403_v42 = vadd.f32 %v2436_v23, %v1388_v36 }
 0x232   :  { %v1353_v33 = vadd.f32 %v1345_v13, %v1317_v1  ;;  %v1411_v29 = vmax.f32 %v1403_v42, 0.0 }
 0x234   :  { %v1389_v8 = vadd.f32 %v1381_v40, %v1353_v33 }
 0x236   :  { %v1404_v32 = vadd.f32 %v2436_v23, %v1389_v8 }
 0x238   :  { %v1412_v19 = vmax.f32 %v1404_v32, 0.0 }
 0x23a   :  { %v1424_v10 = vcombine.low %v1411_v29, %v1412_v19 }
 0x23c   :  { %v1430_v24 = vpack.c.bf16 %v1424_v10, %v1423_v18 }
 0x23e   :  { %1755 = vmatmul.mubr.bf16.vlgmr.msra.gmra.mrb[16].mxu0 %v1430_v24 }
 0x311   :  { %v1756_v43 = vpop.f32.mrb[16].mxu0 }
 0x312   :  { %v1545_v12 = vadd.f32 %v1756_v43, %v1641_v28  ;;  %v1536_v37 = vpop.f32.mrb[17].mxu0 }
 0x313   :  { %v1537_v9 = vadd.f32 %v1641_v28, %v1536_v37  ;;  %v1757_v53 = vpop.f32.mrb[18].mxu0 }
 0x314   :  { %v1553_v30 = vmax.f32 %v1545_v12, 0.0  ;;  %v1548_v50 = vadd.f32 %v1757_v53, %v1641_v28  ;;  %v1539_v23 = vpop.f32.mrb[19].mxu0 }
 0x315   :  { %v1551_v39 = vmax.f32 %v1537_v9, 0.0  ;;  %v1540_v63 = vadd.f32 %v1641_v28, %v1539_v23 }
 0x316   :  { %1557 = vst [vmem:[%s2513_s11 + $0x10] sm:$0xff] %v1553_v30  ;;  %v1554_v11 = vmax.f32 %v1548_v50, 0.0 }
 0x317   :  { %1555 = vst [vmem:[%s2513_s11] sm:$0xff] %v1551_v39  ;;  %v1552_v16 = vmax.f32 %v1540_v63, 0.0 }
 0x318   :  { %1558 = vst [vmem:[%s2513_s11 + $0x18] sm:$0xff] %v1554_v11 }
 0x319   :  { %1556 = vst [vmem:[%s2513_s11 + $0x8] sm:$0xff] %v1552_v16 }

</bundles_post_ra>
